<compile_context>
chip_gen: v7x
topology: tpu7x:2x2x1
jax: 0.10.0
libtpu: 0.0.40
codegen_flags: <defaults>
</compile_context>

<pallas_src>
import functools

import jax
import jax.numpy as jnp
from jax.experimental import pallas as pl
from jax.experimental.pallas import tpu as pltpu


LANE = 128


def _round_up(n, m):
    return -(-n // m) * m


def _pad_axis(x, axis, target):
    pad = target - x.shape[axis]
    if pad <= 0:
        return x
    widths = [(0, 0)] * x.ndim
    widths[axis] = (0, pad)
    return jnp.pad(x, widths)


# ---------------------------------------------------------------------------
# Kernel
# ---------------------------------------------------------------------------
def _decoder_kernel(n_emb_ref, t_emb_ref, hpar_ref, h0_ref, c0_ref,
                    w_ih_n_ref, w_ih_t_ref, w_hh_ref, b_lstm_ref,
                    w_g_h_ref, w_g_p_ref, b_g_ref, w_out_ref, b_out_ref,
                    logp_ref, h_ref, c_ref, *, hidden_pad):
    Hp = hidden_pad
    t = pl.program_id(1)

    # h_ref / c_ref have a constant block index along the step axis -> VMEM resident
    # across all T steps for this batch block; they double as the recurrent carry.
    @pl.when(t == 0)
    def _():
        h_ref[...] = h0_ref[...]
        c_ref[...] = c0_ref[...]

    h_prev = h_ref[...]                      # (Bblk, Hp) f32
    c_prev = c_ref[...]

    xn = n_emb_ref[0]                        # (Bblk, Enp) bf16
    xt = t_emb_ref[0]                        # (Bblk, Etp) bf16
    hp = hpar_ref[0]                         # (Bblk, Hp)  bf16

    # ---- LSTM cell (PyTorch gate order i, f, g, o; each gate lane-padded to Hp) ----
    gates = (jnp.dot(xn, w_ih_n_ref[...], preferred_element_type=jnp.float32)
             + jnp.dot(xt, w_ih_t_ref[...], preferred_element_type=jnp.float32)
             + jnp.dot(h_prev.astype(jnp.bfloat16), w_hh_ref[...],
                       preferred_element_type=jnp.float32)
             + b_lstm_ref[...])              # (Bblk, 4*Hp) f32
    i_g = jax.nn.sigmoid(gates[:, 0 * Hp:1 * Hp])
    f_g = jax.nn.sigmoid(gates[:, 1 * Hp:2 * Hp])
    g_g = jnp.tanh(gates[:, 2 * Hp:3 * Hp])
    o_g = jax.nn.sigmoid(gates[:, 3 * Hp:4 * Hp])
    c_new = f_g * c_prev + i_g * g_g
    h_new = o_g * jnp.tanh(c_new)
    h_ref[...] = h_new
    c_ref[...] = c_new

    # ---- w_global: tanh(cat([out, h_parent]) @ Wg^T + bg) as two dots (no concat) ----
    wt = jnp.tanh(
        jnp.dot(h_new.astype(jnp.bfloat16), w_g_h_ref[...],
                preferred_element_type=jnp.float32)
        + jnp.dot(hp, w_g_p_ref[...], preferred_element_type=jnp.float32)
        + b_g_ref[...])                      # (Bblk, Hp) f32

    # ---- w_out + log_softmax (padded vocab columns carry b_out = -1e30) ----
    logits = (jnp.dot(wt.astype(jnp.bfloat16), w_out_ref[...],
                      preferred_element_type=jnp.float32)
              + b_out_ref[...])              # (Bblk, Vp) f32
    m = jnp.max(logits, axis=1, keepdims=True)
    shifted = logits - m
    lse = jnp.log(jnp.sum(jnp.exp(shifted), axis=1, keepdims=True))
    logp_ref[0] = shifted - lse


# ---------------------------------------------------------------------------
# Wrappers
# ---------------------------------------------------------------------------
def decoder_simple_decode(n_inputs, t_inputs, hc, h_parents, kp):
    """Fused T-step decode in a single pallas_call (weights stay VMEM-resident).

    n_inputs, t_inputs : (T, B) int32 token ids
    hc                 : (h0, c0), each (1, B, H) float32
    h_parents          : (T, B, H) float32
    returns (log_probs (T, B, Vout), (h (1,B,H), c (1,B,H)))  -- h/c after step T-1
    """
    T, B = n_inputs.shape
    H, Hp = kp["hidden_size"], kp["hidden_pad"]
    Vout, Vp = kp["vocab_out"], kp["vocab_pad"]
    Enp = kp["embN_p"].shape[1]
    Etp = kp["embT_p"].shape[1]

    if B <= 128:
        B_pad = _round_up(B, 8)
        B_blk = B_pad
    else:
        B_pad = _round_up(B, 128)
        B_blk = 128
    nb = B_pad // B_blk

    # Embedding gathers (JAX glue) on pre-padded bf16 tables.
    # TODO(synk): move the gathers in-kernel via PrefetchScalarGridSpec scalar prefetch.
    n_emb = _pad_axis(jnp.take(kp["embN_p"], n_inputs, axis=0), 1, B_pad)   # (T,Bp,Enp) bf16
    t_emb = _pad_axis(jnp.take(kp["embT_p"], t_inputs, axis=0), 1, B_pad)   # (T,Bp,Etp) bf16
    hpar = _pad_axis(_pad_axis(h_parents, 2, Hp), 1, B_pad).astype(jnp.bfloat16)

    h0 = _pad_axis(_pad_axis(hc[0][0], 1, Hp), 0, B_pad)                     # (Bp,Hp) f32
    c0 = _pad_axis(_pad_axis(hc[1][0], 1, Hp), 0, B_pad)

    kernel = functools.partial(_decoder_kernel, hidden_pad=Hp)

    def full_spec(arr):   # whole array, constant block index -> DMA'd once, VMEM resident
        return pl.BlockSpec(arr.shape, lambda b, t: (0,) * arr.ndim)

    def step_spec(feat):  # per-step, per-batch-block input
        return pl.BlockSpec((1, B_blk, feat), lambda b, t: (t, b, 0))

    def state_spec():     # recurrent state, constant along the step axis
        return pl.BlockSpec((B_blk, Hp), lambda b, t: (b, 0))

    grid_spec = pltpu.PrefetchScalarGridSpec(
        num_scalar_prefetch=0,
        grid=(nb, T),
        in_specs=[
            step_spec(Enp), step_spec(Etp), step_spec(Hp),
            state_spec(), state_spec(),
            full_spec(kp["w_ih_n"]), full_spec(kp["w_ih_t"]),
            full_spec(kp["w_hh"]), full_spec(kp["b_lstm"]),
            full_spec(kp["w_g_h"]), full_spec(kp["w_g_p"]), full_spec(kp["b_g"]),
            full_spec(kp["w_out"]), full_spec(kp["b_out"]),
        ],
        out_specs=[
            pl.BlockSpec((1, B_blk, Vp), lambda b, t: (t, b, 0)),   # lane-dense log-probs
            state_spec(), state_spec(),                              # final h, c
        ],
    )

    out_shapes = (
        jax.ShapeDtypeStruct((T, B_pad, Vp), jnp.float32),
        jax.ShapeDtypeStruct((B_pad, Hp), jnp.float32),
        jax.ShapeDtypeStruct((B_pad, Hp), jnp.float32),
    )

    logp, h, c = pl.pallas_call(
        kernel,
        out_shape=out_shapes,
        grid_spec=grid_spec,
        compiler_params=pltpu.CompilerParams(
            dimension_semantics=("parallel", "arbitrary")),
    )(n_emb, t_emb, hpar, h0, c0,
      kp["w_ih_n"], kp["w_ih_t"], kp["w_hh"], kp["b_lstm"],
      kp["w_g_h"], kp["w_g_p"], kp["b_g"], kp["w_out"], kp["b_out"])

    return logp[:, :B, :Vout], (h[:B, :H][None], c[:B, :H][None])


def decoder_simple_forward(n_input, t_input, hc, h_parent, kparams):
    """Module-equivalent single-step forward (T == 1 case of the fused kernel)."""
    logp, (h, c) = decoder_simple_decode(
        n_input[None], t_input[None], hc, h_parent[None], kparams)
    return logp[0], (h, c)


# ---------------------------------------------------------------------------
# Parameters
# ---------------------------------------------------------------------------
def init_params(key, *, hidden_size, vocab_sizeT_in, vocab_sizeT_out,
                vocab_sizeN, embedding_sizeT, embedding_sizeN):
    """Raw parameters in PyTorch layout (f32)."""
    E = embedding_sizeN + embedding_sizeT
    H = hidden_size
    ks = jax.random.split(key, 10)
    u = lambda k, shape, s=0.1: jax.random.uniform(k, shape, jnp.float32, -s, s)
    return {
        "hidden_size": H,
        "embN": u(ks[8], (vocab_sizeN, embedding_sizeN), 1.0),
        "embT": u(ks[9], (vocab_sizeT_in, embedding_sizeT), 1.0),
        "w_ih": u(ks[0], (4 * H, E)),
        "w_hh": u(ks[1], (4 * H, H)),
        "b_ih": u(ks[2], (4 * H,)),
        "b_hh": u(ks[3], (4 * H,)),
        "w_g": u(ks[4], (H, 2 * H)),
        "b_g": u(ks[5], (H,)),
        "w_out": u(ks[6], (vocab_sizeT_out, H)),
        "b_out": u(ks[7], (vocab_sizeT_out,)),
    }


def pack_params(params):
    """Pad / transpose / cast raw params into the lane-dense bf16 kernel layout."""
    H = params["hidden_size"]
    Hp = _round_up(H, LANE)
    En = params["embN"].shape[1]
    Et = params["embT"].shape[1]
    Enp = _round_up(En, LANE)
    Etp = _round_up(Et, LANE)
    Vout = params["w_out"].shape[0]
    Vp = _round_up(Vout, LANE)

    def gate_pack(w, in_dim, in_pad):
        # w: (4H, in_dim) -> (in_pad, 4*Hp) bf16, each gate block lane-padded to Hp.
        blocks = []
        for k in range(4):
            g = w[k * H:(k + 1) * H, :].T                       # (in_dim, H)
            blocks.append(jnp.pad(g, ((0, in_pad - in_dim), (0, Hp - H))))
        return jnp.concatenate(blocks, axis=1).astype(jnp.bfloat16)

    def gate_pack_bias(b):
        blocks = [jnp.pad(b[k * H:(k + 1) * H], (0, Hp - H)) for k in range(4)]
        return jnp.concatenate(blocks)[None, :].astype(jnp.float32)

    w_ih = params["w_ih"]
    w_g = params["w_g"]
    pad_hh = lambda m: jnp.pad(m, ((0, Hp - H), (0, Hp - H))).astype(jnp.bfloat16)

    return {
        "hidden_size": H, "hidden_pad": Hp,
        "vocab_out": Vout, "vocab_pad": Vp,
        "embN_p": jnp.pad(params["embN"], ((0, 0), (0, Enp - En))).astype(jnp.bfloat16),
        "embT_p": jnp.pad(params["embT"], ((0, 0), (0, Etp - Et))).astype(jnp.bfloat16),
        "w_ih_n": gate_pack(w_ih[:, :En], En, Enp),             # (Enp, 4Hp) bf16
        "w_ih_t": gate_pack(w_ih[:, En:], Et, Etp),             # (Etp, 4Hp) bf16
        "w_hh": gate_pack(params["w_hh"], H, Hp),               # (Hp, 4Hp) bf16
        "b_lstm": gate_pack_bias(params["b_ih"] + params["b_hh"]),  # (1, 4Hp) f32
        "w_g_h": pad_hh(w_g[:, :H].T),                          # (Hp, Hp) bf16
        "w_g_p": pad_hh(w_g[:, H:].T),                          # (Hp, Hp) bf16
        "b_g": jnp.pad(params["b_g"], (0, Hp - H))[None, :].astype(jnp.float32),
        "w_out": jnp.pad(params["w_out"].T,
                         ((0, Hp - H), (0, Vp - Vout))).astype(jnp.bfloat16),
        # Pad vocab columns with -1e30 so they vanish from log_softmax.
        "b_out": jnp.pad(params["b_out"], (0, Vp - Vout),
                         constant_values=-1e30)[None, :].astype(jnp.float32),
    }


# ---------------------------------------------------------------------------
# Pure-JAX reference (mirrors the kernel's bf16-in / f32-accumulate matmuls)
# ---------------------------------------------------------------------------
def _reference_decode(n_inputs, t_inputs, hc, h_parents, params):
    h, c = hc[0][0], hc[1][0]
    H = params["hidden_size"]
    bf = lambda a: a.astype(jnp.bfloat16)
    w_ih_T = params["w_ih"].T
    w_hh_T = params["w_hh"].T
    b_lstm = (params["b_ih"] + params["b_hh"])[None, :]
    w_g = params["w_g"]
    b_g = params["b_g"][None, :]
    w_out_T = params["w_out"].T
    b_out = params["b_out"][None, :]
    logps = []
    for t in range(n_inputs.shape[0]):
        x = jnp.concatenate([params["embN"][n_inputs[t]],
                             params["embT"][t_inputs[t]]], axis=1)
        gates = (jnp.dot(bf(x), bf(w_ih_T), preferred_element_type=jnp.float32)
                 + jnp.dot(bf(h), bf(w_hh_T), preferred_element_type=jnp.float32)
                 + b_lstm)
        i_g = jax.nn.sigmoid(gates[:, 0 * H:1 * H])
        f_g = jax.nn.sigmoid(gates[:, 1 * H:2 * H])
        g_g = jnp.tanh(gates[:, 2 * H:3 * H])
        o_g = jax.nn.sigmoid(gates[:, 3 * H:4 * H])
        c = f_g * c + i_g * g_g
        h = o_g * jnp.tanh(c)
        wt = jnp.tanh(
            jnp.dot(bf(h), bf(w_g[:, :H].T), preferred_element_type=jnp.float32)
            + jnp.dot(bf(h_parents[t]), bf(w_g[:, H:].T),
                      preferred_element_type=jnp.float32)
            + b_g)
        logits = jnp.dot(bf(wt), bf(w_out_T), preferred_element_type=jnp.float32) + b_out
        logps.append(jax.nn.log_softmax(logits, axis=1))
    return jnp.stack(logps), (h[None], c[None])


# ---------------------------------------------------------------------------
if __name__ == "__main__":
    B = 8
    T_steps = 4
    hidden_size = 32
    vocab_sizeN = 24
    vocab_sizeT_in = 40
    vocab_sizeT_out = 48
    embedding_sizeN = 16
    embedding_sizeT = 16

    key = jax.random.PRNGKey(0)
    kparam_key, k1, k2, k3, k4, k5 = jax.random.split(key, 6)

    params = init_params(
        kparam_key, hidden_size=hidden_size, vocab_sizeT_in=vocab_sizeT_in,
        vocab_sizeT_out=vocab_sizeT_out, vocab_sizeN=vocab_sizeN,
        embedding_sizeT=embedding_sizeT, embedding_sizeN=embedding_sizeN)
    kparams = pack_params(params)

    n_inputs = jax.random.randint(k1, (T_steps, B), 0, vocab_sizeN, dtype=jnp.int32)
    t_inputs = jax.random.randint(k2, (T_steps, B), 0, vocab_sizeT_in, dtype=jnp.int32)
    h0 = jax.random.normal(k3, (1, B, hidden_size), jnp.float32)
    c0 = jax.random.normal(k4, (1, B, hidden_size), jnp.float32)
    h_parents = jax.random.normal(k5, (T_steps, B, hidden_size), jnp.float32)

    # --- module-equivalent single-step forward ---
    logp1, (h1, c1) = decoder_simple_forward(
        n_inputs[0], t_inputs[0], (h0, c0), h_parents[0], kparams)
    jax.block_until_ready((logp1, h1, c1))

    ref_logp1, (ref_h1, ref_c1) = _reference_decode(
        n_inputs[:1], t_inputs[:1], (h0, c0), h_parents[:1], params)
    assert jnp.allclose(logp1, ref_logp1[0], atol=1e-2, rtol=1e-2)
    assert jnp.allclose(h1, ref_h1, atol=1e-2, rtol=1e-2)
    assert jnp.allclose(c1, ref_c1, atol=1e-2, rtol=1e-2)

    # --- fused multi-step decode (weights resident across the step grid axis) ---
    logpT, (hT, cT) = decoder_simple_decode(
        n_inputs, t_inputs, (h0, c0), h_parents, kparams)
    jax.block_until_ready((logpT, hT, cT))

    ref_logpT, (ref_hT, ref_cT) = _reference_decode(
        n_inputs, t_inputs, (h0, c0), h_parents, params)
    assert jnp.allclose(logpT, ref_logpT, atol=1e-2, rtol=1e-2)
    assert jnp.allclose(hT, ref_hT, atol=1e-2, rtol=1e-2)
    assert jnp.allclose(cT, ref_cT, atol=1e-2, rtol=1e-2)

    print("KERNEL_OK")
</pallas_src>

<mosaic_0001>
module attributes {stable_mosaic.version = 11 : i64} {
  func.func @_decoder_kernel(%arg0: i32, %arg1: i32, %arg2: memref<1x8x128xbf16, #tpu.memory_space<vmem>>, %arg3: memref<1x8x128xbf16, #tpu.memory_space<vmem>>, %arg4: memref<1x8x128xbf16, #tpu.memory_space<vmem>>, %arg5: memref<8x128xf32, #tpu.memory_space<vmem>>, %arg6: memref<8x128xf32, #tpu.memory_space<vmem>>, %arg7: memref<128x512xbf16, #tpu.memory_space<vmem>>, %arg8: memref<128x512xbf16, #tpu.memory_space<vmem>>, %arg9: memref<128x512xbf16, #tpu.memory_space<vmem>>, %arg10: memref<1x512xf32, #tpu.memory_space<vmem>>, %arg11: memref<128x128xbf16, #tpu.memory_space<vmem>>, %arg12: memref<128x128xbf16, #tpu.memory_space<vmem>>, %arg13: memref<1x128xf32, #tpu.memory_space<vmem>>, %arg14: memref<128x128xbf16, #tpu.memory_space<vmem>>, %arg15: memref<1x128xf32, #tpu.memory_space<vmem>>, %arg16: memref<1x8x128xf32, #tpu.memory_space<vmem>>, %arg17: memref<8x128xf32, #tpu.memory_space<vmem>>, %arg18: memref<8x128xf32, #tpu.memory_space<vmem>>) attributes {dimension_semantics = [#tpu.dimension_semantics<parallel>, #tpu.dimension_semantics<arbitrary>], iteration_bounds = array<i64: 1, 1>, scalar_prefetch = 0 : i64, scratch_operands = 0 : i64, tpu.core_type = #tpu.core_type<tc>, window_params = [{transform_indices = @transform_0, window_bounds = array<i64: 1, 8, 128>}, {transform_indices = @transform_1, window_bounds = array<i64: 1, 8, 128>}, {transform_indices = @transform_2, window_bounds = array<i64: 1, 8, 128>}, {transform_indices = @transform_3, window_bounds = array<i64: 8, 128>}, {transform_indices = @transform_4, window_bounds = array<i64: 8, 128>}, {pipeline_mode = #tpu.pipeline_mode<synchronous>, transform_indices = @transform_5, window_bounds = array<i64: 128, 512>}, {pipeline_mode = #tpu.pipeline_mode<synchronous>, transform_indices = @transform_6, window_bounds = array<i64: 128, 512>}, {pipeline_mode = #tpu.pipeline_mode<synchronous>, transform_indices = @transform_7, window_bounds = array<i64: 128, 512>}, {pipeline_mode = #tpu.pipeline_mode<synchronous>, transform_indices = @transform_8, window_bounds = array<i64: 1, 512>}, {pipeline_mode = #tpu.pipeline_mode<synchronous>, transform_indices = @transform_9, window_bounds = array<i64: 128, 128>}, {pipeline_mode = #tpu.pipeline_mode<synchronous>, transform_indices = @transform_10, window_bounds = array<i64: 128, 128>}, {pipeline_mode = #tpu.pipeline_mode<synchronous>, transform_indices = @transform_11, window_bounds = array<i64: 1, 128>}, {pipeline_mode = #tpu.pipeline_mode<synchronous>, transform_indices = @transform_12, window_bounds = array<i64: 128, 128>}, {pipeline_mode = #tpu.pipeline_mode<synchronous>, transform_indices = @transform_13, window_bounds = array<i64: 1, 128>}, {transform_indices = @transform_14, window_bounds = array<i64: 1, 8, 128>}, {transform_indices = @transform_15, window_bounds = array<i64: 8, 128>}, {transform_indices = @transform_16, window_bounds = array<i64: 8, 128>}]} {
    %c0_i32 = arith.constant 0 : i32
    %0 = arith.cmpi eq, %arg1, %c0_i32 : i32
    %1 = arith.extui %0 : i1 to i32
    %c0_i32_0 = arith.constant 0 : i32
    %2 = arith.cmpi ne, %1, %c0_i32_0 : i32
    scf.if %2 {
      %c0_48 = arith.constant 0 : index
      %c0_49 = arith.constant 0 : index
      %79 = vector.load %arg5[%c0_48, %c0_49] : memref<8x128xf32, #tpu.memory_space<vmem>>, vector<8x128xf32>
      %c0_50 = arith.constant 0 : index
      %c0_51 = arith.constant 0 : index
      %80 = vector.load %arg17[%c0_50, %c0_51] : memref<8x128xf32, #tpu.memory_space<vmem>>, vector<8x128xf32>
      tpu.vector_store %arg17[%c0_50, %c0_51], %79 {strides = array<i32>} : memref<8x128xf32, #tpu.memory_space<vmem>>, vector<8x128xf32>,
      %c0_52 = arith.constant 0 : index
      %c0_53 = arith.constant 0 : index
      %81 = vector.load %arg6[%c0_52, %c0_53] : memref<8x128xf32, #tpu.memory_space<vmem>>, vector<8x128xf32>
      %c0_54 = arith.constant 0 : index
      %c0_55 = arith.constant 0 : index
      %82 = vector.load %arg18[%c0_54, %c0_55] : memref<8x128xf32, #tpu.memory_space<vmem>>, vector<8x128xf32>
      tpu.vector_store %arg18[%c0_54, %c0_55], %81 {strides = array<i32>} : memref<8x128xf32, #tpu.memory_space<vmem>>, vector<8x128xf32>,
    } else {
    }
    %c0 = arith.constant 0 : index
    %c0_1 = arith.constant 0 : index
    %3 = vector.load %arg17[%c0, %c0_1] : memref<8x128xf32, #tpu.memory_space<vmem>>, vector<8x128xf32>
    %c0_2 = arith.constant 0 : index
    %c0_3 = arith.constant 0 : index
    %4 = vector.load %arg18[%c0_2, %c0_3] : memref<8x128xf32, #tpu.memory_space<vmem>>, vector<8x128xf32>
    %c0_4 = arith.constant 0 : index
    %c0_5 = arith.constant 0 : index
    %c0_6 = arith.constant 0 : index
    %5 = vector.load %arg2[%c0_4, %c0_5, %c0_6] : memref<1x8x128xbf16, #tpu.memory_space<vmem>>, vector<1x8x128xbf16>
    %6 = vector.shape_cast %5 : vector<1x8x128xbf16> to vector<8x128xbf16>
    %c0_7 = arith.constant 0 : index
    %c0_8 = arith.constant 0 : index
    %c0_9 = arith.constant 0 : index
    %7 = vector.load %arg3[%c0_7, %c0_8, %c0_9] : memref<1x8x128xbf16, #tpu.memory_space<vmem>>, vector<1x8x128xbf16>
    %8 = vector.shape_cast %7 : vector<1x8x128xbf16> to vector<8x128xbf16>
    %c0_10 = arith.constant 0 : index
    %c0_11 = arith.constant 0 : index
    %c0_12 = arith.constant 0 : index
    %9 = vector.load %arg4[%c0_10, %c0_11, %c0_12] : memref<1x8x128xbf16, #tpu.memory_space<vmem>>, vector<1x8x128xbf16>
    %10 = vector.shape_cast %9 : vector<1x8x128xbf16> to vector<8x128xbf16>
    %c0_13 = arith.constant 0 : index
    %c0_14 = arith.constant 0 : index
    %11 = vector.load %arg7[%c0_13, %c0_14] : memref<128x512xbf16, #tpu.memory_space<vmem>>, vector<128x512xbf16>
    %cst = arith.constant dense<0.000000e+00> : vector<8x512xf32>
    %12 = tpu.matmul %6, %11, %cst {dimension_numbers = #tpu.dot_dimension_numbers<[1], [0], [0], [1], [0, 0, 1, 1], [], []>} : vector<8x128xbf16>, vector<128x512xbf16>, vector<8x512xf32> -> vector<8x512xf32>
    %c0_15 = arith.constant 0 : index
    %c0_16 = arith.constant 0 : index
    %13 = vector.load %arg8[%c0_15, %c0_16] : memref<128x512xbf16, #tpu.memory_space<vmem>>, vector<128x512xbf16>
    %cst_17 = arith.constant dense<0.000000e+00> : vector<8x512xf32>
    %14 = tpu.matmul %8, %13, %cst_17 {dimension_numbers = #tpu.dot_dimension_numbers<[1], [0], [0], [1], [0, 0, 1, 1], [], []>} : vector<8x128xbf16>, vector<128x512xbf16>, vector<8x512xf32> -> vector<8x512xf32>
    %15 = arith.addf %12, %14 : vector<8x512xf32>
    %16 = arith.truncf %3 : vector<8x128xf32> to vector<8x128xbf16>
    %c0_18 = arith.constant 0 : index
    %c0_19 = arith.constant 0 : index
    %17 = vector.load %arg9[%c0_18, %c0_19] : memref<128x512xbf16, #tpu.memory_space<vmem>>, vector<128x512xbf16>
    %cst_20 = arith.constant dense<0.000000e+00> : vector<8x512xf32>
    %18 = tpu.matmul %16, %17, %cst_20 {dimension_numbers = #tpu.dot_dimension_numbers<[1], [0], [0], [1], [0, 0, 1, 1], [], []>} : vector<8x128xbf16>, vector<128x512xbf16>, vector<8x512xf32> -> vector<8x512xf32>
    %19 = arith.addf %15, %18 : vector<8x512xf32>
    %c0_21 = arith.constant 0 : index
    %c0_22 = arith.constant 0 : index
    %20 = vector.load %arg10[%c0_21, %c0_22] : memref<1x512xf32, #tpu.memory_space<vmem>>, vector<1x512xf32>
    %21 = vector.broadcast %20 : vector<1x512xf32> to vector<8x512xf32>
    %22 = arith.addf %19, %21 : vector<8x512xf32>
    %23 = vector.extract_strided_slice %22 {offsets = [0, 0], sizes = [8, 128], strides = [1, 1]} : vector<8x512xf32> to vector<8x128xf32>
    %24 = arith.negf %23 : vector<8x128xf32>
    %25 = math.exp %24 : vector<8x128xf32>
    %cst_23 = arith.constant 1.000000e+00 : f32
    %26 = vector.broadcast %cst_23 : f32 to vector<8x128xf32>
    %27 = arith.addf %26, %25 : vector<8x128xf32>
    %28 = arith.divf %26, %27 : vector<8x128xf32>
    %29 = vector.extract_strided_slice %22 {offsets = [0, 128], sizes = [8, 128], strides = [1, 1]} : vector<8x512xf32> to vector<8x128xf32>
    %30 = arith.negf %29 : vector<8x128xf32>
    %31 = math.exp %30 : vector<8x128xf32>
    %cst_24 = arith.constant 1.000000e+00 : f32
    %32 = vector.broadcast %cst_24 : f32 to vector<8x128xf32>
    %33 = arith.addf %32, %31 : vector<8x128xf32>
    %34 = arith.divf %32, %33 : vector<8x128xf32>
    %35 = vector.extract_strided_slice %22 {offsets = [0, 256], sizes = [8, 128], strides = [1, 1]} : vector<8x512xf32> to vector<8x128xf32>
    %36 = math.tanh %35 : vector<8x128xf32>
    %37 = vector.extract_strided_slice %22 {offsets = [0, 384], sizes = [8, 128], strides = [1, 1]} : vector<8x512xf32> to vector<8x128xf32>
    %38 = arith.negf %37 : vector<8x128xf32>
    %39 = math.exp %38 : vector<8x128xf32>
    %cst_25 = arith.constant 1.000000e+00 : f32
    %40 = vector.broadcast %cst_25 : f32 to vector<8x128xf32>
    %41 = arith.addf %40, %39 : vector<8x128xf32>
    %42 = arith.divf %40, %41 : vector<8x128xf32>
    %43 = arith.mulf %34, %4 : vector<8x128xf32>
    %44 = arith.mulf %28, %36 : vector<8x128xf32>
    %45 = arith.addf %43, %44 : vector<8x128xf32>
    %46 = math.tanh %45 : vector<8x128xf32>
    %47 = arith.mulf %42, %46 : vector<8x128xf32>
    %c0_26 = arith.constant 0 : index
    %c0_27 = arith.constant 0 : index
    %48 = vector.load %arg17[%c0_26, %c0_27] : memref<8x128xf32, #tpu.memory_space<vmem>>, vector<8x128xf32>
    tpu.vector_store %arg17[%c0_26, %c0_27], %47 {strides = array<i32>} : memref<8x128xf32, #tpu.memory_space<vmem>>, vector<8x128xf32>,
    %c0_28 = arith.constant 0 : index
    %c0_29 = arith.constant 0 : index
    %49 = vector.load %arg18[%c0_28, %c0_29] : memref<8x128xf32, #tpu.memory_space<vmem>>, vector<8x128xf32>
    tpu.vector_store %arg18[%c0_28, %c0_29], %45 {strides = array<i32>} : memref<8x128xf32, #tpu.memory_space<vmem>>, vector<8x128xf32>,
    %50 = arith.truncf %47 : vector<8x128xf32> to vector<8x128xbf16>
    %c0_30 = arith.constant 0 : index
    %c0_31 = arith.constant 0 : index
    %51 = vector.load %arg11[%c0_30, %c0_31] : memref<128x128xbf16, #tpu.memory_space<vmem>>, vector<128x128xbf16>
    %cst_32 = arith.constant dense<0.000000e+00> : vector<8x128xf32>
    %52 = tpu.matmul %50, %51, %cst_32 {dimension_numbers = #tpu.dot_dimension_numbers<[1], [0], [0], [1], [0, 0, 1, 1], [], []>} : vector<8x128xbf16>, vector<128x128xbf16>, vector<8x128xf32> -> vector<8x128xf32>
    %c0_33 = arith.constant 0 : index
    %c0_34 = arith.constant 0 : index
    %53 = vector.load %arg12[%c0_33, %c0_34] : memref<128x128xbf16, #tpu.memory_space<vmem>>, vector<128x128xbf16>
    %cst_35 = arith.constant dense<0.000000e+00> : vector<8x128xf32>
    %54 = tpu.matmul %10, %53, %cst_35 {dimension_numbers = #tpu.dot_dimension_numbers<[1], [0], [0], [1], [0, 0, 1, 1], [], []>} : vector<8x128xbf16>, vector<128x128xbf16>, vector<8x128xf32> -> vector<8x128xf32>
    %55 = arith.addf %52, %54 : vector<8x128xf32>
    %c0_36 = arith.constant 0 : index
    %c0_37 = arith.constant 0 : index
    %56 = vector.load %arg13[%c0_36, %c0_37] : memref<1x128xf32, #tpu.memory_space<vmem>>, vector<1x128xf32>
    %57 = vector.broadcast %56 : vector<1x128xf32> to vector<8x128xf32>
    %58 = arith.addf %55, %57 : vector<8x128xf32>
    %59 = math.tanh %58 : vector<8x128xf32>
    %60 = arith.truncf %59 : vector<8x128xf32> to vector<8x128xbf16>
    %c0_38 = arith.constant 0 : index
    %c0_39 = arith.constant 0 : index
    %61 = vector.load %arg14[%c0_38, %c0_39] : memref<128x128xbf16, #tpu.memory_space<vmem>>, vector<128x128xbf16>
    %cst_40 = arith.constant dense<0.000000e+00> : vector<8x128xf32>
    %62 = tpu.matmul %60, %61, %cst_40 {dimension_numbers = #tpu.dot_dimension_numbers<[1], [0], [0], [1], [0, 0, 1, 1], [], []>} : vector<8x128xbf16>, vector<128x128xbf16>, vector<8x128xf32> -> vector<8x128xf32>
    %c0_41 = arith.constant 0 : index
    %c0_42 = arith.constant 0 : index
    %63 = vector.load %arg15[%c0_41, %c0_42] : memref<1x128xf32, #tpu.memory_space<vmem>>, vector<1x128xf32>
    %64 = vector.broadcast %63 : vector<1x128xf32> to vector<8x128xf32>
    %65 = arith.addf %62, %64 : vector<8x128xf32>
    %cst_43 = arith.constant dense<0xFF800000> : vector<8xf32>
    %66 = vector.multi_reduction <maximumf>, %65, %cst_43 [1] : vector<8x128xf32> to vector<8xf32>
    %67 = vector.shape_cast %66 : vector<8xf32> to vector<8x1xf32>
    %68 = vector.broadcast %67 : vector<8x1xf32> to vector<8x128xf32>
    %69 = arith.subf %65, %68 : vector<8x128xf32>
    %70 = math.exp %69 : vector<8x128xf32>
    %cst_44 = arith.constant dense<0.000000e+00> : vector<8xf32>
    %71 = vector.multi_reduction <add>, %70, %cst_44 [1] : vector<8x128xf32> to vector<8xf32>
    %72 = vector.shape_cast %71 : vector<8xf32> to vector<8x1xf32>
    %73 = math.log %72 : vector<8x1xf32>
    %74 = vector.broadcast %73 : vector<8x1xf32> to vector<8x128xf32>
    %75 = arith.subf %69, %74 : vector<8x128xf32>
    %c0_45 = arith.constant 0 : index
    %c0_46 = arith.constant 0 : index
    %c0_47 = arith.constant 0 : index
    %76 = vector.load %arg16[%c0_45, %c0_46, %c0_47] : memref<1x8x128xf32, #tpu.memory_space<vmem>>, vector<1x8x128xf32>
    %77 = vector.shape_cast %76 : vector<1x8x128xf32> to vector<8x128xf32>
    %78 = vector.shape_cast %75 : vector<8x128xf32> to vector<1x8x128xf32>
    tpu.vector_store %arg16[%c0_45, %c0_46, %c0_47], %78 {strides = array<i32>} : memref<1x8x128xf32, #tpu.memory_space<vmem>>, vector<1x8x128xf32>,
    return
  }
  func.func @transform_0(%arg0: i32, %arg1: i32) -> (i32, i32, i32) {
    %c0_i32 = arith.constant 0 : i32
    %c0_i32_0 = arith.constant 0 : i32
    return %arg1, %arg0, %c0_i32 : i32, i32, i32
  }
  func.func @transform_1(%arg0: i32, %arg1: i32) -> (i32, i32, i32) {
    %c0_i32 = arith.constant 0 : i32
    %c0_i32_0 = arith.constant 0 : i32
    return %arg1, %arg0, %c0_i32 : i32, i32, i32
  }
  func.func @transform_2(%arg0: i32, %arg1: i32) -> (i32, i32, i32) {
    %c0_i32 = arith.constant 0 : i32
    %c0_i32_0 = arith.constant 0 : i32
    return %arg1, %arg0, %c0_i32 : i32, i32, i32
  }
  func.func @transform_3(%arg0: i32, %arg1: i32) -> (i32, i32) {
    %c0_i32 = arith.constant 0 : i32
    %c0_i32_0 = arith.constant 0 : i32
    return %arg0, %c0_i32 : i32, i32
  }
  func.func @transform_4(%arg0: i32, %arg1: i32) -> (i32, i32) {
    %c0_i32 = arith.constant 0 : i32
    %c0_i32_0 = arith.constant 0 : i32
    return %arg0, %c0_i32 : i32, i32
  }
  func.func @transform_5(%arg0: i32, %arg1: i32) -> (i32, i32) {
    %c0_i32 = arith.constant 0 : i32
    %c0_i32_0 = arith.constant 0 : i32
    %c0_i32_1 = arith.constant 0 : i32
    return %c0_i32, %c0_i32_0 : i32, i32
  }
  func.func @transform_6(%arg0: i32, %arg1: i32) -> (i32, i32) {
    %c0_i32 = arith.constant 0 : i32
    %c0_i32_0 = arith.constant 0 : i32
    %c0_i32_1 = arith.constant 0 : i32
    return %c0_i32, %c0_i32_0 : i32, i32
  }
  func.func @transform_7(%arg0: i32, %arg1: i32) -> (i32, i32) {
    %c0_i32 = arith.constant 0 : i32
    %c0_i32_0 = arith.constant 0 : i32
    %c0_i32_1 = arith.constant 0 : i32
    return %c0_i32, %c0_i32_0 : i32, i32
  }
  func.func @transform_8(%arg0: i32, %arg1: i32) -> (i32, i32) {
    %c0_i32 = arith.constant 0 : i32
    %c0_i32_0 = arith.constant 0 : i32
    %c0_i32_1 = arith.constant 0 : i32
    return %c0_i32, %c0_i32_0 : i32, i32
  }
  func.func @transform_9(%arg0: i32, %arg1: i32) -> (i32, i32) {
    %c0_i32 = arith.constant 0 : i32
    %c0_i32_0 = arith.constant 0 : i32
    %c0_i32_1 = arith.constant 0 : i32
    return %c0_i32, %c0_i32_0 : i32, i32
  }
  func.func @transform_10(%arg0: i32, %arg1: i32) -> (i32, i32) {
    %c0_i32 = arith.constant 0 : i32
    %c0_i32_0 = arith.constant 0 : i32
    %c0_i32_1 = arith.constant 0 : i32
    return %c0_i32, %c0_i32_0 : i32, i32
  }
  func.func @transform_11(%arg0: i32, %arg1: i32) -> (i32, i32) {
    %c0_i32 = arith.constant 0 : i32
    %c0_i32_0 = arith.constant 0 : i32
    %c0_i32_1 = arith.constant 0 : i32
    return %c0_i32, %c0_i32_0 : i32, i32
  }
  func.func @transform_12(%arg0: i32, %arg1: i32) -> (i32, i32) {
    %c0_i32 = arith.constant 0 : i32
    %c0_i32_0 = arith.constant 0 : i32
    %c0_i32_1 = arith.constant 0 : i32
    return %c0_i32, %c0_i32_0 : i32, i32
  }
  func.func @transform_13(%arg0: i32, %arg1: i32) -> (i32, i32) {
    %c0_i32 = arith.constant 0 : i32
    %c0_i32_0 = arith.constant 0 : i32
    %c0_i32_1 = arith.constant 0 : i32
    return %c0_i32, %c0_i32_0 : i32, i32
  }
  func.func @transform_14(%arg0: i32, %arg1: i32) -> (i32, i32, i32) {
    %c0_i32 = arith.constant 0 : i32
    %c0_i32_0 = arith.constant 0 : i32
    return %arg1, %arg0, %c0_i32 : i32, i32, i32
  }
  func.func @transform_15(%arg0: i32, %arg1: i32) -> (i32, i32) {
    %c0_i32 = arith.constant 0 : i32
    %c0_i32_0 = arith.constant 0 : i32
    return %arg0, %c0_i32 : i32, i32
  }
  func.func @transform_16(%arg0: i32, %arg1: i32) -> (i32, i32) {
    %c0_i32 = arith.constant 0 : i32
    %c0_i32_0 = arith.constant 0 : i32
    return %arg0, %c0_i32 : i32, i32
  }
}

</mosaic_0001>

<bundles_post_ra>
// kernel: tpu_custom_call.1
= control target key start
LH: loop header
LB: loop body
LE: loop exit
PB: predicated region body
PF: predicated region fallthrough
CT: control target
= control target key end

     0   :  { %s2533_s0 = inlined_call_operand.hbm [shape: bf16[1,8,128], index: 0, kind: input, shape index: {}]   ;;  %s2534_s1 = inlined_call_operand.hbm [shape: bf16[1,8,128], index: 1, kind: input, shape index: {}]   ;;  %s2535_s2 = inlined_call_operand.hbm [shape: bf16[1,8,128], index: 2, kind: input, shape index: {}]   ;;  %s2536_s3 = inlined_call_operand.vmem [shape: f32[8,128], index: 3, kind: input, shape index: {}]   ;;  %s2537_s4 = inlined_call_operand.hbm [shape: f32[8,128], index: 4, kind: input, shape index: {}]   ;;  %s2538_s5 = inlined_call_operand.hbm [shape: bf16[128,512], index: 5, kind: input, shape index: {}]   ;;  %s2539_s6 = inlined_call_operand.hbm [shape: bf16[128,512], index: 6, kind: input, shape index: {}]   ;;  %s2540_s7 = inlined_call_operand.hbm [shape: bf16[128,512], index: 7, kind: input, shape index: {}]   ;;  %s2541_s8 = inlined_call_operand.vmem [shape: f32[1,512], index: 8, kind: input, shape index: {}]   ;;  %s2542_s9 = inlined_call_operand.hbm [shape: bf16[128,128], index: 9, kind: input, shape index: {}]   ;;  %s2543_s10 = inlined_call_operand.hbm [shape: bf16[128,128], index: 10, kind: input, shape index: {}]   ;;  %s2544_s11 = inlined_call_operand.vmem [shape: f32[1,128], index: 11, kind: input, shape index: {}]   ;;  %s2545_s12 = inlined_call_operand.hbm [shape: bf16[128,128], index: 12, kind: input, shape index: {}]   ;;  %s2546_s13 = inlined_call_operand.vmem [shape: f32[1,128], index: 13, kind: input, shape index: {}]   ;;  %s2547_s14 = inlined_call_operand.hbm [shape: f32[1,8,128], index: 14, kind: output, shape index: {0}]   ;;  %s2548_s15 = inlined_call_operand.hbm [shape: f32[8,128], index: 15, kind: output, shape index: {1}]   ;;  %s2549_s16 = inlined_call_operand.hbm [shape: f32[8,128], index: 16, kind: output, shape index: {2}]  }
   0x1   :  { %2553 = sst [smem:[#allocation31_spill]] %s2533_s0 }
   0x2   :  { %22 = vsyncpa [#allocation3], 0 }
   0x3   :  { %23 = vsyncpa [#allocation6], 0 }
   0x4   :  { %24 = vsyncpa [#allocation9], 0 }
   0x5   :  { %25 = vsyncpa [#allocation12], 0 }
   0x6   :  { %26 = vsyncpa [#allocation15], 0 }
   0x7   :  { %27 = vsyncpa [#allocation18], 0 }
   0x8   :  { %28 = vsyncpa [#allocation4], 0 }
   0x9   :  { %29 = vsyncpa [#allocation21], 0  ;;  %s2185_s21 = smov [#allocation5]   ;;  %s2186_s23 = smov [#allocation8]  }
   0xa   :  { %s46_s22 = sshll.u32 %s2185_s21, 4  ;;  %s68_s24 = sshll.u32 %s2186_s23, 4  ;;  %s47_s22 = int_to_ptr.vmem [resolvable:$true] %s46_s22  ;;  %s69_s24 = int_to_ptr.vmem [resolvable:$true] %s68_s24 }
   0xb   :  { %s1883_s27 = scalar_lea.hbm %s2534_s1, 64 }
   0xc   :  { %p1884_p0 = scmp.ne.s32.totalorder %s2534_s1, %s1883_s27  ;;  %p1887_p1 = scmp.lt.u32.totalorder %s1883_s27, %s2534_s1 }
   0xe   :  { %p1889_p2 = pnand %p1887_p1, %p1884_p0 }
  0x10   :  { %1892 = shalt.err (!%p1889_p2)
}
  0x11   :  { %s1893_s17 = scalar_lea.vmem %s47_s22, 64  ;;  %p1898_p4 = scmp.lt.s32.totalorder %s47_s22, %s47_s22 }
  0x12   :  { %p1894_p3 = scmp.ne.s32.totalorder %s47_s22, %s1893_s17  ;;  %p1899_p5 = scmp.lt.s32.totalorder %s1893_s17, %s1893_s17 }
  0x14   :  { %p1900_p6 = por %p1899_p5, %p1898_p4 }
  0x16   :  { %p1901_p7 = pnand %p1900_p6, %p1894_p3 }
  0x18   :  { %1904 = shalt.err (!%p1901_p7)
}
  0x19   :  { %49 = dma.hbm_to_vmem [thread:$0]  %s2534_s1, 64, %s47_s22, [#allocation6]  }
  0x1a   :  { %s1905_s23 = scalar_lea.hbm %s2537_s4, 128 }
  0x1b   :  { %p1906_p8 = scmp.ne.s32.totalorder %s2537_s4, %s1905_s23  ;;  %p1909_p9 = scmp.lt.u32.totalorder %s1905_s23, %s2537_s4 }
  0x1d   :  { %p1911_p10 = pnand %p1909_p9, %p1906_p8 }
  0x1f   :  { %1914 = shalt.err (!%p1911_p10)
}
  0x20   :  { %s1915_s29 = scalar_lea.vmem %s69_s24, 128  ;;  %p1920_p12 = scmp.lt.s32.totalorder %s69_s24, %s69_s24 }
  0x21   :  { %p1916_p11 = scmp.ne.s32.totalorder %s69_s24, %s1915_s29  ;;  %p1921_p13 = scmp.lt.s32.totalorder %s1915_s29, %s1915_s29 }
  0x23   :  { %p1922_p0 = por %p1921_p13, %p1920_p12 }
  0x25   :  { %p1923_p1 = pnand %p1922_p0, %p1916_p11 }
  0x27   :  { %1926 = shalt.err (!%p1923_p1)
}
  0x28   :  { %71 = dma.hbm_to_vmem [thread:$0]  %s2537_s4, 128, %s69_s24, [#allocation9]  }
  0x29   :  { %s2187_s30 = smov [#allocation11]   ;;  %s2188_s17 = smov [#allocation14]  }
  0x2a   :  { %s89_s0 = sshll.u32 %s2187_s30, 4  ;;  %s115_s18 = sshll.u32 %s2188_s17, 4  ;;  %s90_s0 = int_to_ptr.vmem [resolvable:$true] %s89_s0  ;;  %s2314_s18 = int_to_ptr.vmem [resolvable:$true] %s115_s18 }
  0x2b   :  { %s1927_s21 = scalar_lea.hbm %s2539_s6, 4096 }
  0x2c   :  { %p1928_p2 = scmp.ne.s32.totalorder %s2539_s6, %s1927_s21  ;;  %p1931_p3 = scmp.lt.u32.totalorder %s1927_s21, %s2539_s6 }
  0x2e   :  { %p1933_p4 = pnand %p1931_p3, %p1928_p2 }
  0x30   :  { %1936 = shalt.err (!%p1933_p4)
}
  0x31   :  { %s1937_s4 = scalar_lea.vmem %s90_s0, 4096  ;;  %p1942_p6 = scmp.lt.s32.totalorder %s90_s0, %s90_s0 }
  0x32   :  { %p1938_p5 = scmp.ne.s32.totalorder %s90_s0, %s1937_s4  ;;  %p1943_p7 = scmp.lt.s32.totalorder %s1937_s4, %s1937_s4 }
  0x34   :  { %p1944_p8 = por %p1943_p7, %p1942_p6 }
  0x36   :  { %p1945_p9 = pnand %p1944_p8, %p1938_p5 }
  0x38   :  { %1948 = shalt.err (!%p1945_p9)
}
  0x39   :  { %s2551_s24 = smov 256   ;;  %s2190_s28 = smov 16  }
  0x3a   :  { %95 = dma.hbm_to_vmem [thread:$0]  %s2539_s6, 4096, %s90_s0, [#allocation12], %s2551_s24, %s2551_s24, %s2190_s28  }
  0x3b   :  { %s1949_s17 = scalar_lea.hbm %s2542_s9, 1024 }
  0x3c   :  { %p1950_p10 = scmp.ne.s32.totalorder %s2542_s9, %s1949_s17  ;;  %p1953_p11 = scmp.lt.u32.totalorder %s1949_s17, %s2542_s9 }
  0x3e   :  { %p1955_p12 = pnand %p1953_p11, %p1950_p10 }
  0x40   :  { %1958 = shalt.err (!%p1955_p12)
}
  0x41   :  { %s1959_s25 = scalar_lea.vmem %s2314_s18, 1024  ;;  %p1964_p0 = scmp.lt.s32.totalorder %s2314_s18, %s2314_s18 }
  0x42   :  { %p1960_p13 = scmp.ne.s32.totalorder %s2314_s18, %s1959_s25  ;;  %p1965_p1 = scmp.lt.s32.totalorder %s1959_s25, %s1959_s25 }
  0x44   :  { %p1966_p2 = por %p1965_p1, %p1964_p0 }
  0x46   :  { %p1967_p3 = pnand %p1966_p2, %p1960_p13 }
  0x48   :  { %1970 = shalt.err (!%p1967_p3)
}
  0x49   :  { %s2191_s6 = smov 64   ;;  %s2192_s0 = smov 4  }
  0x4a   :  { %121 = dma.hbm_to_vmem [thread:$0]  %s2542_s9, 1024, %s2314_s18, [#allocation15], %s2191_s6, %s2191_s6, %s2192_s0  }
  0x4b   :  { %s2193_s4 = smov [#allocation2]   ;;  %s2194_s1 = smov [#allocation7]  }
  0x4c   :  { %s36_s29 = sshll.u32 %s2193_s4, 4  ;;  %s56_s22 = sshll.u32 %s2194_s1, 4  ;;  %s37_s29 = int_to_ptr.vmem [resolvable:$true] %s36_s29  ;;  %s57_s22 = int_to_ptr.vmem [resolvable:$true] %s56_s22 }
  0x4d   :  { %s2554_s19 = sld [smem:[#allocation31_spill]] }
  0x53   :  { %s1971_s20 = scalar_lea.hbm %s2554_s19, 64 }
  0x54   :  { %p1972_p4 = scmp.ne.s32.totalorder %s2554_s19, %s1971_s20  ;;  %p1975_p5 = scmp.lt.u32.totalorder %s1971_s20, %s2554_s19 }
  0x56   :  { %p1977_p6 = pnand %p1975_p5, %p1972_p4 }
  0x58   :  { %1980 = shalt.err (!%p1977_p6)
}
  0x59   :  { %s1981_s9 = scalar_lea.vmem %s37_s29, 64  ;;  %p1986_p8 = scmp.lt.s32.totalorder %s37_s29, %s37_s29 }
  0x5a   :  { %p1982_p7 = scmp.ne.s32.totalorder %s37_s29, %s1981_s9  ;;  %p1987_p9 = scmp.lt.s32.totalorder %s1981_s9, %s1981_s9 }
  0x5c   :  { %p1988_p10 = por %p1987_p9, %p1986_p8 }
  0x5e   :  { %p1989_p11 = pnand %p1988_p10, %p1982_p7 }
  0x60   :  { %1992 = shalt.err (!%p1989_p11)
}
  0x61   :  { %39 = dma.hbm_to_vmem [thread:$0]  %s2554_s19, 64, %s37_s29, [#allocation3]  }
  0x62   :  { %s1993_s1 = scalar_lea.hbm %s2535_s2, 64 }
  0x63   :  { %p1994_p12 = scmp.ne.s32.totalorder %s2535_s2, %s1993_s1  ;;  %p1997_p13 = scmp.lt.u32.totalorder %s1993_s1, %s2535_s2 }
  0x65   :  { %p1999_p0 = pnand %p1997_p13, %p1994_p12 }
  0x67   :  { %2002 = shalt.err (!%p1999_p0)
}
  0x68   :  { %s2003_s21 = scalar_lea.vmem %s57_s22, 64  ;;  %p2008_p2 = scmp.lt.s32.totalorder %s57_s22, %s57_s22 }
  0x69   :  { %p2004_p1 = scmp.ne.s32.totalorder %s57_s22, %s2003_s21  ;;  %p2009_p3 = scmp.lt.s32.totalorder %s2003_s21, %s2003_s21 }
  0x6b   :  { %p2010_p4 = por %p2009_p3, %p2008_p2 }
  0x6d   :  { %p2011_p5 = pnand %p2010_p4, %p2004_p1 }
  0x6f   :  { %2014 = shalt.err (!%p2011_p5)
}
  0x70   :  { %59 = dma.hbm_to_vmem [thread:$0]  %s2535_s2, 64, %s57_s22, [#allocation6]  }
  0x71   :  { %s2195_s23 = smov [#allocation10]   ;;  %s2196_s9 = smov [#allocation13]  }
  0x72   :  { %s77_s25 = sshll.u32 %s2195_s23, 4  ;;  %s101_s18 = sshll.u32 %s2196_s9, 4  ;;  %s78_s25 = int_to_ptr.vmem [resolvable:$true] %s77_s25  ;;  %s2375_s18 = int_to_ptr.vmem [resolvable:$true] %s101_s18 }
  0x73   :  { %s2015_s4 = scalar_lea.hbm %s2538_s5, 4096 }
  0x74   :  { %p2016_p6 = scmp.ne.s32.totalorder %s2538_s5, %s2015_s4  ;;  %p2019_p7 = scmp.lt.u32.totalorder %s2015_s4, %s2538_s5 }
  0x76   :  { %p2021_p8 = pnand %p2019_p7, %p2016_p6 }
  0x78   :  { %2024 = shalt.err (!%p2021_p8)
}
  0x79   :  { %s2025_s2 = scalar_lea.vmem %s78_s25, 4096  ;;  %p2030_p10 = scmp.lt.s32.totalorder %s78_s25, %s78_s25 }
  0x7a   :  { %p2026_p9 = scmp.ne.s32.totalorder %s78_s25, %s2025_s2  ;;  %p2031_p11 = scmp.lt.s32.totalorder %s2025_s2, %s2025_s2 }
  0x7c   :  { %p2032_p12 = por %p2031_p11, %p2030_p10 }
  0x7e   :  { %p2033_p13 = pnand %p2032_p12, %p2026_p9 }
  0x80   :  { %2036 = shalt.err (!%p2033_p13)
}
  0x81   :  { %s2555_s22 = smov 256   ;;  %s2037_s23 = scalar_lea.hbm %s2540_s7, 4096 }
  0x82   :  { %83 = dma.hbm_to_vmem [thread:$0]  %s2538_s5, 4096, %s78_s25, [#allocation9], %s2555_s22, %s2555_s22, %s2190_s28  }
  0x83   :  { %p2038_p0 = scmp.ne.s32.totalorder %s2540_s7, %s2037_s23  ;;  %p2041_p1 = scmp.lt.u32.totalorder %s2037_s23, %s2540_s7 }
  0x85   :  { %p2043_p2 = pnand %p2041_p1, %p2038_p0 }
  0x87   :  { %2046 = shalt.err (!%p2043_p2)
}
  0x88   :  { %s2047_s1 = scalar_lea.vmem %s2375_s18, 4096  ;;  %p2052_p4 = scmp.lt.s32.totalorder %s2375_s18, %s2375_s18 }
  0x89   :  { %p2048_p3 = scmp.ne.s32.totalorder %s2375_s18, %s2047_s1  ;;  %p2053_p5 = scmp.lt.s32.totalorder %s2047_s1, %s2047_s1 }
  0x8b   :  { %p2054_p6 = por %p2053_p5, %p2052_p4 }
  0x8d   :  { %p2055_p7 = pnand %p2054_p6, %p2048_p3 }
  0x8f   :  { %2058 = shalt.err (!%p2055_p7)
}
  0x90   :  { %107 = dma.hbm_to_vmem [thread:$0]  %s2540_s7, 4096, %s2375_s18, [#allocation12], %s2555_s22, %s2555_s22, %s2190_s28  }
  0x91   :  { %s2197_s30 = smov [#allocation16]   ;;  %s2198_s17 = smov [#allocation17]  }
  0x92   :  { %s127_s24 = sshll.u32 %s2197_s30, 4  ;;  %s141_s2 = sshll.u32 %s2198_s17, 4  ;;  %s128_s24 = int_to_ptr.vmem [resolvable:$true] %s127_s24  ;;  %s2412_s2 = int_to_ptr.vmem [resolvable:$true] %s141_s2 }
  0x93   :  { %s2059_s29 = scalar_lea.hbm %s2543_s10, 1024 }
  0x94   :  { %p2060_p8 = scmp.ne.s32.totalorder %s2543_s10, %s2059_s29  ;;  %p2063_p9 = scmp.lt.u32.totalorder %s2059_s29, %s2543_s10 }
  0x96   :  { %p2065_p10 = pnand %p2063_p9, %p2060_p8 }
  0x98   :  { %2068 = shalt.err (!%p2065_p10)
}
  0x99   :  { %s2069_s7 = scalar_lea.vmem %s128_s24, 1024  ;;  %p2074_p12 = scmp.lt.s32.totalorder %s128_s24, %s128_s24 }
  0x9a   :  { %p2070_p11 = scmp.ne.s32.totalorder %s128_s24, %s2069_s7  ;;  %p2075_p13 = scmp.lt.s32.totalorder %s2069_s7, %s2069_s7 }
  0x9c   :  { %p2076_p0 = por %p2075_p13, %p2074_p12 }
  0x9e   :  { %p2077_p1 = pnand %p2076_p0, %p2070_p11 }
  0xa0   :  { %2080 = shalt.err (!%p2077_p1)
}
  0xa1   :  { %133 = dma.hbm_to_vmem [thread:$0]  %s2543_s10, 1024, %s128_s24, [#allocation15], %s2191_s6, %s2191_s6, %s2192_s0  }
  0xa2   :  { %s2081_s4 = scalar_lea.hbm %s2545_s12, 1024 }
  0xa3   :  { %p2082_p2 = scmp.ne.s32.totalorder %s2545_s12, %s2081_s4  ;;  %p2085_p3 = scmp.lt.u32.totalorder %s2081_s4, %s2545_s12 }
  0xa5   :  { %p2087_p4 = pnand %p2085_p3, %p2082_p2 }
  0xa7   :  { %2090 = shalt.err (!%p2087_p4)
}
  0xa8   :  { %s2091_s17 = scalar_lea.vmem %s2412_s2, 1024  ;;  %p2096_p6 = scmp.lt.s32.totalorder %s2412_s2, %s2412_s2 }
  0xa9   :  { %p2092_p5 = scmp.ne.s32.totalorder %s2412_s2, %s2091_s17  ;;  %p2097_p7 = scmp.lt.s32.totalorder %s2091_s17, %s2091_s17 }
  0xab   :  { %p2098_p8 = por %p2097_p7, %p2096_p6 }
  0xad   :  { %p2099_p9 = pnand %p2098_p8, %p2092_p5 }
  0xaf   :  { %2102 = shalt.err (!%p2099_p9)
}
  0xb0   :  { %147 = dma.hbm_to_vmem [thread:$0]  %s2545_s12, 1024, %s2412_s2, [#allocation18], %s2191_s6, %s2191_s6, %s2192_s0  }
  0xb1   :  { %2169 = dma.done.wait [#allocation3], 64  }
  0xb2   :  { %2170 = vsyncadd [#allocation3], 4294967232 }
  0xb3   :  { %2171 = dma.done.wait [#allocation6], 128  }
  0xb4   :  { %2172 = vsyncadd [#allocation6], 4294967168 }
  0xb5   :  { %2173 = dma.done.wait [#allocation9], 4224  }
  0xb6   :  { %2174 = vsyncadd [#allocation9], 4294963072 }
  0xb7   :  { %2175 = dma.done.wait [#allocation12], 8192  }
  0xb8   :  { %2176 = vsyncadd [#allocation12], 4294959104 }
  0xb9   :  { %2177 = dma.done.wait [#allocation15], 2048  }
  0xba   :  { %2178 = vsyncadd [#allocation15], 4294965248 }
  0xbb   :  { %2179 = dma.done.wait [#allocation18], 1024  }
  0xbc   :  { %2180 = vsyncadd [#allocation18], 4294966272  ;;  %v2199_v0 = vmov 0   ;;  %v1693_v1 = vld [vmem:[#allocation11 + $0x4] ss:$16 sps:$4 sm:$0xff]   ;;  %vm2201_vm0 = vmmov 0  }
  0xbd   :  { %450 = vmatprep.mubr.bf16.mxu0 %v2199_v0  ;;  %491 = vmatprep.mubr.bf16.mxu1 %v2199_v0  ;;  %v1695_v2 = vld [vmem:[#allocation11 + $0xc] ss:$16 sps:$4 sm:$0xff]   ;;  %v1697_v3 = vld [vmem:[#allocation11] ss:$16 sps:$4 sm:$0xff]   ;;  %v1698_v4 = vld [vmem:[#allocation11 + $0x8] ss:$16 sps:$4 sm:$0xff]  }
  0xbe   :  { %418 = vmatprep.subr.bf16.mxu0 %v1693_v1  ;;  %459 = vmatprep.subr.bf16.mxu1 %v1695_v2  ;;  %v1699_v5 = vld [vmem:[#allocation11 + $0x24] ss:$16 sps:$4 sm:$0xff]   ;;  %v1701_v6 = vld [vmem:[#allocation11 + $0x2c] ss:$16 sps:$4 sm:$0xff]   ;;  %v1703_v7 = vld [vmem:[#allocation11 + $0x20] ss:$16 sps:$4 sm:$0xff]  }
  0xbf   :  { %419 = vmatpush1.bf16.msra.mxu0 %v1697_v3  ;;  %460 = vmatpush1.bf16.msra.mxu1 %v1698_v4  ;;  %v1704_v8 = vld [vmem:[#allocation11 + $0x28] ss:$16 sps:$4 sm:$0xff]   ;;  %v1705_v9 = vld [vmem:[#allocation11 + $0x44] ss:$16 sps:$4 sm:$0xff]   ;;  %v1707_v10 = vld [vmem:[#allocation11 + $0x4c] ss:$16 sps:$4 sm:$0xff]  }
  0xc0   :  { %420 = vmatprep.subr.bf16.mxu0 %v1699_v5  ;;  %461 = vmatprep.subr.bf16.mxu1 %v1701_v6  ;;  %v1709_v11 = vld [vmem:[#allocation11 + $0x40] ss:$16 sps:$4 sm:$0xff]   ;;  %v1710_v12 = vld [vmem:[#allocation11 + $0x48] ss:$16 sps:$4 sm:$0xff]   ;;  %v1711_v13 = vld [vmem:[#allocation11 + $0x64] ss:$16 sps:$4 sm:$0xff]  }
  0xc1   :  { %v1713_v14 = vld [vmem:[#allocation11 + $0x6c] ss:$16 sps:$4 sm:$0xff]   ;;  %v1715_v15 = vld [vmem:[#allocation11 + $0x60] ss:$16 sps:$4 sm:$0xff]   ;;  %v1716_v16 = vld [vmem:[#allocation11 + $0x68] ss:$16 sps:$4 sm:$0xff]  }
  0xc2   :  { %v1717_v17 = vld [vmem:[#allocation11 + $0x84] ss:$16 sps:$4 sm:$0xff]   ;;  %v1719_v18 = vld [vmem:[#allocation11 + $0x8c] ss:$16 sps:$4 sm:$0xff]   ;;  %v1721_v19 = vld [vmem:[#allocation11 + $0x80] ss:$16 sps:$4 sm:$0xff]  }
  0xc3   :  { %421 = vmatpush1.bf16.msra.mxu0 %v1703_v7  ;;  %462 = vmatpush1.bf16.msra.mxu1 %v1704_v8  ;;  %v1722_v20 = vld [vmem:[#allocation11 + $0x88] ss:$16 sps:$4 sm:$0xff]   ;;  %v1723_v21 = vld [vmem:[#allocation11 + $0xa4] ss:$16 sps:$4 sm:$0xff]   ;;  %v1725_v22 = vld [vmem:[#allocation11 + $0xac] ss:$16 sps:$4 sm:$0xff]  }
  0xc4   :  { %422 = vmatprep.subr.bf16.mxu0 %v1705_v9  ;;  %463 = vmatprep.subr.bf16.mxu1 %v1707_v10  ;;  %v1727_v23 = vld [vmem:[#allocation11 + $0xa0] ss:$16 sps:$4 sm:$0xff]   ;;  %v1728_v24 = vld [vmem:[#allocation11 + $0xa8] ss:$16 sps:$4 sm:$0xff]   ;;  %v1729_v25 = vld [vmem:[#allocation11 + $0xc4] ss:$16 sps:$4 sm:$0xff]  }
  0xc5   :  { %v1731_v26 = vld [vmem:[#allocation11 + $0xcc] ss:$16 sps:$4 sm:$0xff]   ;;  %v1733_v27 = vld [vmem:[#allocation11 + $0xc0] ss:$16 sps:$4 sm:$0xff]   ;;  %v1734_v28 = vld [vmem:[#allocation11 + $0xc8] ss:$16 sps:$4 sm:$0xff]  }
  0xc6   :  { %v1735_v29 = vld [vmem:[#allocation11 + $0xe4] ss:$16 sps:$4 sm:$0xff]   ;;  %v1737_v30 = vld [vmem:[#allocation11 + $0xec] ss:$16 sps:$4 sm:$0xff]   ;;  %v1739_v31 = vld [vmem:[#allocation11 + $0xe0] ss:$16 sps:$4 sm:$0xff]  }
  0xc7   :  { %423 = vmatpush1.bf16.msra.mxu0 %v1709_v11  ;;  %464 = vmatpush1.bf16.msra.mxu1 %v1710_v12  ;;  %v1740_v32 = vld [vmem:[#allocation11 + $0xe8] ss:$16 sps:$4 sm:$0xff]   ;;  %v1743_v33 = vld [vmem:[#allocation10 + $0x4] ss:$16 sps:$4 sm:$0xff]   ;;  %v1746_v34 = vld [vmem:[#allocation10 + $0xc] ss:$16 sps:$4 sm:$0xff]  }
  0xc8   :  { %424 = vmatprep.subr.bf16.mxu0 %v1711_v13  ;;  %465 = vmatprep.subr.bf16.mxu1 %v1713_v14  ;;  %v192_v35 = vld [vmem:[#allocation5] sm:$0xf]  ;;  %v1744_v37 = vld [vmem:[#allocation10 + $0x8] ss:$16 sps:$4 sm:$0xff]   ;;  %v1749_v38 = vld [vmem:[#allocation10 + $0x24] ss:$16 sps:$4 sm:$0xff]  }
  0xc9   :  { %v1741_v36 = vld [vmem:[#allocation10] ss:$16 sps:$4 sm:$0xff]   ;;  %v1752_v39 = vld [vmem:[#allocation10 + $0x2c] ss:$16 sps:$4 sm:$0xff]   ;;  %v1750_v41 = vld [vmem:[#allocation10 + $0x28] ss:$16 sps:$4 sm:$0xff]  }
  0xca   :  { %v1747_v40 = vld [vmem:[#allocation10 + $0x20] ss:$16 sps:$4 sm:$0xff]   ;;  %v1755_v42 = vld [vmem:[#allocation10 + $0x44] ss:$16 sps:$4 sm:$0xff]   ;;  %v1758_v43 = vld [vmem:[#allocation10 + $0x4c] ss:$16 sps:$4 sm:$0xff]  }
  0xcb   :  { %425 = vmatpush1.bf16.msra.mxu0 %v1715_v15  ;;  %466 = vmatpush1.bf16.msra.mxu1 %v1716_v16  ;;  %v1753_v44 = vld [vmem:[#allocation10 + $0x40] ss:$16 sps:$4 sm:$0xff]   ;;  %v1756_v45 = vld [vmem:[#allocation10 + $0x48] ss:$16 sps:$4 sm:$0xff]   ;;  %v1761_v46 = vld [vmem:[#allocation10 + $0x64] ss:$16 sps:$4 sm:$0xff]  }
  0xcc   :  { %426 = vmatprep.subr.bf16.mxu0 %v1717_v17  ;;  %467 = vmatprep.subr.bf16.mxu1 %v1719_v18  ;;  %v1764_v47 = vld [vmem:[#allocation10 + $0x6c] ss:$16 sps:$4 sm:$0xff]   ;;  %v1759_v48 = vld [vmem:[#allocation10 + $0x60] ss:$16 sps:$4 sm:$0xff]   ;;  %v1762_v49 = vld [vmem:[#allocation10 + $0x68] ss:$16 sps:$4 sm:$0xff]  }
  0xcd   :  { %v1767_v50 = vld [vmem:[#allocation10 + $0x84] ss:$16 sps:$4 sm:$0xff]   ;;  %v1770_v51 = vld [vmem:[#allocation10 + $0x8c] ss:$16 sps:$4 sm:$0xff]   ;;  %v1765_v52 = vld [vmem:[#allocation10 + $0x80] ss:$16 sps:$4 sm:$0xff]  }
  0xce   :  { %v1768_v53 = vld [vmem:[#allocation10 + $0x88] ss:$16 sps:$4 sm:$0xff]   ;;  %v1773_v54 = vld [vmem:[#allocation10 + $0xa4] ss:$16 sps:$4 sm:$0xff]   ;;  %v1776_v55 = vld [vmem:[#allocation10 + $0xac] ss:$16 sps:$4 sm:$0xff]  }
  0xcf   :  { %427 = vmatpush1.bf16.msra.mxu0 %v1721_v19  ;;  %468 = vmatpush1.bf16.msra.mxu1 %v1722_v20  ;;  %v1771_v56 = vld [vmem:[#allocation10 + $0xa0] ss:$16 sps:$4 sm:$0xff]   ;;  %v1774_v57 = vld [vmem:[#allocation10 + $0xa8] ss:$16 sps:$4 sm:$0xff]   ;;  %v1779_v58 = vld [vmem:[#allocation10 + $0xc4] ss:$16 sps:$4 sm:$0xff]  }
  0xd0   :  { %428 = vmatprep.subr.bf16.mxu0 %v1723_v21  ;;  %469 = vmatprep.subr.bf16.mxu1 %v1725_v22  ;;  %v1782_v59 = vld [vmem:[#allocation10 + $0xcc] ss:$16 sps:$4 sm:$0xff]   ;;  %v1777_v60 = vld [vmem:[#allocation10 + $0xc0] ss:$16 sps:$4 sm:$0xff]   ;;  %v1780_v61 = vld [vmem:[#allocation10 + $0xc8] ss:$16 sps:$4 sm:$0xff]  }
  0xd1   :  { %v1785_v62 = vld [vmem:[#allocation10 + $0xe4] ss:$16 sps:$4 sm:$0xff]   ;;  %v1788_v63 = vld [vmem:[#allocation10 + $0xec] ss:$16 sps:$4 sm:$0xff]   ;;  %v1783_v1 = vld [vmem:[#allocation10 + $0xe0] ss:$16 sps:$4 sm:$0xff]  }
  0xd2   :  { %v1786_v2 = vld [vmem:[#allocation10 + $0xe8] ss:$16 sps:$4 sm:$0xff]   ;;  %v1791_v3 = vld [vmem:[#allocation13 + $0x4] ss:$16 sps:$4 sm:$0xff]   ;;  %v1794_v4 = vld [vmem:[#allocation13 + $0xc] ss:$16 sps:$4 sm:$0xff]  }
  0xd3   :  { %429 = vmatpush1.bf16.msra.mxu0 %v1727_v23  ;;  %470 = vmatpush1.bf16.msra.mxu1 %v1728_v24  ;;  %v191_v5 = vld [vmem:[#allocation2] sm:$0xf]  ;;  %v1789_v6 = vld [vmem:[#allocation13] ss:$16 sps:$4 sm:$0xff]   ;;  %v1792_v7 = vld [vmem:[#allocation13 + $0x8] ss:$16 sps:$4 sm:$0xff]  }
  0xd4   :  { %430 = vmatprep.subr.bf16.mxu0 %v1729_v25  ;;  %471 = vmatprep.subr.bf16.mxu1 %v1731_v26  ;;  %v1797_v8 = vld [vmem:[#allocation13 + $0x24] ss:$16 sps:$4 sm:$0xff]   ;;  %v1800_v9 = vld [vmem:[#allocation13 + $0x2c] ss:$16 sps:$4 sm:$0xff]   ;;  %v1795_v10 = vld [vmem:[#allocation13 + $0x20] ss:$16 sps:$4 sm:$0xff]  }
  0xd5   :  { %v1798_v11 = vld [vmem:[#allocation13 + $0x28] ss:$16 sps:$4 sm:$0xff]   ;;  %v1803_v12 = vld [vmem:[#allocation13 + $0x44] ss:$16 sps:$4 sm:$0xff]   ;;  %v1806_v13 = vld [vmem:[#allocation13 + $0x4c] ss:$16 sps:$4 sm:$0xff]  }
  0xd6   :  { %v1801_v14 = vld [vmem:[#allocation13 + $0x40] ss:$16 sps:$4 sm:$0xff]   ;;  %v1804_v15 = vld [vmem:[#allocation13 + $0x48] ss:$16 sps:$4 sm:$0xff]   ;;  %v1809_v16 = vld [vmem:[#allocation13 + $0x64] ss:$16 sps:$4 sm:$0xff]  }
  0xd7   :  { %431 = vmatpush1.bf16.msra.mxu0 %v1733_v27  ;;  %472 = vmatpush1.bf16.msra.mxu1 %v1734_v28  ;;  %v1812_v17 = vld [vmem:[#allocation13 + $0x6c] ss:$16 sps:$4 sm:$0xff]   ;;  %v1807_v18 = vld [vmem:[#allocation13 + $0x60] ss:$16 sps:$4 sm:$0xff]   ;;  %v1810_v19 = vld [vmem:[#allocation13 + $0x68] ss:$16 sps:$4 sm:$0xff]  }
  0xd8   :  { %432 = vmatprep.subr.bf16.mxu0 %v1735_v29  ;;  %473 = vmatprep.subr.bf16.mxu1 %v1737_v30  ;;  %v1815_v20 = vld [vmem:[#allocation13 + $0x84] ss:$16 sps:$4 sm:$0xff]   ;;  %v1818_v21 = vld [vmem:[#allocation13 + $0x8c] ss:$16 sps:$4 sm:$0xff]   ;;  %v1813_v22 = vld [vmem:[#allocation13 + $0x80] ss:$16 sps:$4 sm:$0xff]  }
  0xd9   :  { %v1816_v23 = vld [vmem:[#allocation13 + $0x88] ss:$16 sps:$4 sm:$0xff]   ;;  %v1824_v24 = vld [vmem:[#allocation13 + $0xac] ss:$16 sps:$4 sm:$0xff]   ;;  %v1819_v25 = vld [vmem:[#allocation13 + $0xa0] ss:$16 sps:$4 sm:$0xff]  }
  0xda   :  { %v1822_v26 = vld [vmem:[#allocation13 + $0xa8] ss:$16 sps:$4 sm:$0xff]   ;;  %v1827_v27 = vld [vmem:[#allocation13 + $0xc4] ss:$16 sps:$4 sm:$0xff]   ;;  %v1830_v28 = vld [vmem:[#allocation13 + $0xcc] ss:$16 sps:$4 sm:$0xff]  }
  0xdb   :  { %433 = vmatpush1.bf16.msra.mxu0 %v1739_v31  ;;  %474 = vmatpush1.bf16.msra.mxu1 %v1740_v32  ;;  %v1825_v29 = vld [vmem:[#allocation13 + $0xc0] ss:$16 sps:$4 sm:$0xff]   ;;  %v1828_v30 = vld [vmem:[#allocation13 + $0xc8] ss:$16 sps:$4 sm:$0xff]   ;;  %v1833_v31 = vld [vmem:[#allocation13 + $0xe4] ss:$16 sps:$4 sm:$0xff]  }
  0xdc   :  { %660 = vmatprep.subr.bf16.mxu0 %v1743_v33  ;;  %701 = vmatprep.subr.bf16.mxu1 %v1746_v34  ;;  %v1836_v32 = vld [vmem:[#allocation13 + $0xec] ss:$16 sps:$4 sm:$0xff]   ;;  %v1831_v33 = vld [vmem:[#allocation13 + $0xe0] ss:$16 sps:$4 sm:$0xff]   ;;  %v1834_v34 = vld [vmem:[#allocation13 + $0xe8] ss:$16 sps:$4 sm:$0xff]  }
  0xde   :  { %451 = vmatmul.mubr.bf16.vlgmr.msra.gmra.mrb[0].mxu0 %v192_v35  ;;  %492 = vmatmul.mubr.bf16.vlgmr.msra.gmra.mrb[0].mxu1 %v192_v35  ;;  %v185_v35 = vld [vmem:[%s2536_s3] sm:$0xff] }
  0xdf   :  { %661 = vmatpush1.bf16.msra.mxu0 %v1741_v36  ;;  %702 = vmatpush1.bf16.msra.mxu1 %v1744_v37  ;;  %v742_v36 = vpack.c.bf16 %v185_v35, %v185_v35  ;;  %v1837_v37 = vld [vmem:[#allocation16] sm:$0xff]  }
  0xe0   :  { %662 = vmatprep.subr.bf16.mxu0 %v1749_v38  ;;  %703 = vmatprep.subr.bf16.mxu1 %v1752_v39  ;;  %v2200_v38 = vmov 0.0   ;;  %v1838_v39 = vld [vmem:[#allocation14] sm:$0xff]  }
  0xe1   :  { %692 = vmatprep.mubr.bf16.mxu0 %v2199_v0  ;;  %733 = vmatprep.mubr.bf16.mxu1 %v2199_v0 }
  0xe3   :  { %663 = vmatpush1.bf16.msra.mxu0 %v1747_v40  ;;  %704 = vmatpush1.bf16.msra.mxu1 %v1750_v41  ;;  %v1839_v40 = vld [vmem:[#allocation16 + $0x8] sm:$0xff]  }
  0xe4   :  { %664 = vmatprep.subr.bf16.mxu0 %v1755_v42  ;;  %705 = vmatprep.subr.bf16.mxu1 %v1758_v43  ;;  %v1840_v41 = vld [vmem:[#allocation14 + $0x8] sm:$0xff]   ;;  %v1841_v42 = vld [vmem:[#allocation16 + $0x10] sm:$0xff]  }
  0xe5   :  { %v1842_v43 = vld [vmem:[#allocation14 + $0x10] sm:$0xff]  }
  0xe7   :  { %665 = vmatpush1.bf16.msra.mxu0 %v1753_v44  ;;  %706 = vmatpush1.bf16.msra.mxu1 %v1756_v45  ;;  %v1843_v44 = vld [vmem:[#allocation16 + $0x18] sm:$0xff]  }
  0xe8   :  { %666 = vmatprep.subr.bf16.mxu0 %v1761_v46  ;;  %707 = vmatprep.subr.bf16.mxu1 %v1764_v47  ;;  %v1844_v45 = vld [vmem:[#allocation14 + $0x18] sm:$0xff]   ;;  %v1845_v46 = vld [vmem:[#allocation16 + $0x20] sm:$0xff]  }
  0xe9   :  { %v1846_v47 = vld [vmem:[#allocation14 + $0x20] sm:$0xff]  }
  0xeb   :  { %667 = vmatpush1.bf16.msra.mxu0 %v1759_v48  ;;  %708 = vmatpush1.bf16.msra.mxu1 %v1762_v49  ;;  %v1847_v48 = vld [vmem:[#allocation16 + $0x28] sm:$0xff]  }
  0xec   :  { %668 = vmatprep.subr.bf16.mxu0 %v1767_v50  ;;  %709 = vmatprep.subr.bf16.mxu1 %v1770_v51  ;;  %v1848_v49 = vld [vmem:[#allocation14 + $0x28] sm:$0xff]   ;;  %v1849_v50 = vld [vmem:[#allocation16 + $0x30] sm:$0xff]  }
  0xed   :  { %v1850_v51 = vld [vmem:[#allocation14 + $0x30] sm:$0xff]  }
  0xef   :  { %669 = vmatpush1.bf16.msra.mxu0 %v1765_v52  ;;  %710 = vmatpush1.bf16.msra.mxu1 %v1768_v53  ;;  %v1851_v52 = vld [vmem:[#allocation16 + $0x38] sm:$0xff]  }
  0xf0   :  { %670 = vmatprep.subr.bf16.mxu0 %v1773_v54  ;;  %711 = vmatprep.subr.bf16.mxu1 %v1776_v55  ;;  %v1852_v53 = vld [vmem:[#allocation14 + $0x38] sm:$0xff]   ;;  %v193_v54 = vld [vmem:[#allocation7] sm:$0xf]  ;;  %v1853_v55 = vld [vmem:[#allocation17] sm:$0xff]  }
  0xf3   :  { %671 = vmatpush1.bf16.msra.mxu0 %v1771_v56  ;;  %712 = vmatpush1.bf16.msra.mxu1 %v1774_v57  ;;  %v1854_v56 = vld [vmem:[#allocation17 + $0x8] sm:$0xff]   ;;  %v1855_v57 = vld [vmem:[#allocation17 + $0x10] sm:$0xff]  }
  0xf4   :  { %672 = vmatprep.subr.bf16.mxu0 %v1779_v58  ;;  %713 = vmatprep.subr.bf16.mxu1 %v1782_v59 }
  0xf7   :  { %673 = vmatpush1.bf16.msra.mxu0 %v1777_v60  ;;  %714 = vmatpush1.bf16.msra.mxu1 %v1780_v61 }
  0xf8   :  { %674 = vmatprep.subr.bf16.mxu0 %v1785_v62  ;;  %715 = vmatprep.subr.bf16.mxu1 %v1788_v63 }
  0xfb   :  { %675 = vmatpush1.bf16.msra.mxu0 %v1783_v1  ;;  %716 = vmatpush1.bf16.msra.mxu1 %v1786_v2 }
  0xfc   :  { %935 = vmatprep.subr.bf16.mxu0 %v1791_v3  ;;  %976 = vmatprep.subr.bf16.mxu1 %v1794_v4 }
  0xfe   :  { %693 = vmatmul.mubr.bf16.vlgmr.msra.gmra.mrb[4].mxu0 %v191_v5  ;;  %734 = vmatmul.mubr.bf16.vlgmr.msra.gmra.mrb[4].mxu1 %v191_v5 }
  0xff   :  { %936 = vmatpush1.bf16.msra.mxu0 %v1789_v6  ;;  %977 = vmatpush1.bf16.msra.mxu1 %v1792_v7 }
 0x100   :  { %937 = vmatprep.subr.bf16.mxu0 %v1797_v8  ;;  %978 = vmatprep.subr.bf16.mxu1 %v1800_v9 }
 0x101   :  { %967 = vmatprep.mubr.bf16.mxu0 %v2199_v0  ;;  %1008 = vmatprep.mubr.bf16.mxu1 %v2199_v0  ;;  %v1821_v0 = vld [vmem:[#allocation13 + $0xa4] ss:$16 sps:$4 sm:$0xff]  }
 0x103   :  { %938 = vmatpush1.bf16.msra.mxu0 %v1795_v10  ;;  %979 = vmatpush1.bf16.msra.mxu1 %v1798_v11 }
 0x104   :  { %939 = vmatprep.subr.bf16.mxu0 %v1803_v12  ;;  %980 = vmatprep.subr.bf16.mxu1 %v1806_v13 }
 0x107   :  { %940 = vmatpush1.bf16.msra.mxu0 %v1801_v14  ;;  %981 = vmatpush1.bf16.msra.mxu1 %v1804_v15  ;;  %v1023_v15 = vlaneseq }
 0x108   :  { %941 = vmatprep.subr.bf16.mxu0 %v1809_v16  ;;  %982 = vmatprep.subr.bf16.mxu1 %v1812_v17 }
 0x109   :  { %v1024_v16 = vshrl.u32 %v1023_v15, 7 }
 0x10b   :  { %942 = vmatpush1.bf16.msra.mxu0 %v1807_v18  ;;  %983 = vmatpush1.bf16.msra.mxu1 %v1810_v19  ;;  %v1025_v17 = vsub.s32 0, %v1024_v16  ;;  %v1021_v18 = vld [vmem:[%s2541_s8] sm:$0xf]  ;;  %v1029_v19 = vsub.s32 1, %v1024_v16 }
 0x10c   :  { %943 = vmatprep.subr.bf16.mxu0 %v1815_v20  ;;  %984 = vmatprep.subr.bf16.mxu1 %v1818_v21 }
 0x10d   :  { %v1026_v20 = vrot.slane %v1021_v18, %v1025_v17 }
 0x10f   :  { %944 = vmatpush1.bf16.msra.mxu0 %v1813_v22  ;;  %985 = vmatpush1.bf16.msra.mxu1 %v1816_v23  ;;  %v1030_v23 = vrot.slane %v1021_v18, %v1029_v19 }
 0x110   :  { %945 = vmatprep.subr.bf16.mxu0 %v1821_v0  ;;  %986 = vmatprep.subr.bf16.mxu1 %v1824_v24 }
 0x113   :  { %946 = vmatpush1.bf16.msra.mxu0 %v1819_v25  ;;  %987 = vmatpush1.bf16.msra.mxu1 %v1822_v26 }
 0x114   :  { %947 = vmatprep.subr.bf16.mxu0 %v1827_v27  ;;  %988 = vmatprep.subr.bf16.mxu1 %v1830_v28 }
 0x117   :  { %948 = vmatpush1.bf16.msra.mxu0 %v1825_v29  ;;  %989 = vmatpush1.bf16.msra.mxu1 %v1828_v30  ;;  %v1037_v29 = vsub.s32 3, %v1024_v16 }
 0x118   :  { %949 = vmatprep.subr.bf16.mxu0 %v1833_v31  ;;  %990 = vmatprep.subr.bf16.mxu1 %v1836_v32 }
 0x11b   :  { %950 = vmatpush1.bf16.msra.mxu0 %v1831_v33  ;;  %991 = vmatpush1.bf16.msra.mxu1 %v1834_v34 }
 0x11c   :  { %1613 = vmatprep.subr.bf16.mxu0 %v2200_v38  ;;  %1633 = vmatprep.subr.bf16.mxu1 %v2200_v38 }
 0x11e   :  { %968 = vmatmul.mubr.bf16.vlgmr.msra.gmra.mrb[8].mxu0 %v742_v36  ;;  %1009 = vmatmul.mubr.bf16.vlgmr.msra.gmra.mrb[8].mxu1 %v742_v36 }
 0x11f   :  { %1614 = vmatpush3.bf16.msra.mxu0 %v1837_v37  ;;  %1634 = vmatpush3.bf16.msra.mxu1 %v1838_v39  ;;  %v1038_v39 = vrot.slane %v1021_v18, %v1037_v29 }
 0x120   :  { %1615 = vmatprep.subr.bf16.mxu0 %v2200_v38  ;;  %1635 = vmatprep.subr.bf16.mxu1 %v2200_v38 }
 0x121   :  { %1629 = vmatprep.mubr.msk.bf16.mxu0 %vm2201_vm0, %v2200_v38  ;;  %1649 = vmatprep.mubr.msk.bf16.mxu1 %vm2201_vm0, %v2200_v38 }
 0x123   :  { %1616 = vmatpush3.bf16.msra.mxu0 %v1839_v40  ;;  %1636 = vmatpush3.bf16.msra.mxu1 %v1840_v41  ;;  %v1856_v40 = vld [vmem:[#allocation17 + $0x18] sm:$0xff]   ;;  %v1033_v41 = vsub.s32 2, %v1024_v16 }
 0x124   :  { %1617 = vmatprep.subr.bf16.mxu0 %v2200_v38  ;;  %1637 = vmatprep.subr.bf16.mxu1 %v2200_v38 }
 0x127   :  { %1618 = vmatpush3.bf16.msra.mxu0 %v1841_v42  ;;  %1638 = vmatpush3.bf16.msra.mxu1 %v1842_v43  ;;  %v1034_v43 = vrot.slane %v1021_v18, %v1033_v41 }
 0x128   :  { %1619 = vmatprep.subr.bf16.mxu0 %v2200_v38  ;;  %1639 = vmatprep.subr.bf16.mxu1 %v2200_v38 }
 0x12b   :  { %1620 = vmatpush3.bf16.msra.mxu0 %v1843_v44  ;;  %1640 = vmatpush3.bf16.msra.mxu1 %v1844_v45 }
 0x12c   :  { %1621 = vmatprep.subr.bf16.mxu0 %v2200_v38  ;;  %1641 = vmatprep.subr.bf16.mxu1 %v2200_v38 }
 0x12f   :  { %1622 = vmatpush3.bf16.msra.mxu0 %v1845_v46  ;;  %1642 = vmatpush3.bf16.msra.mxu1 %v1846_v47 }
 0x130   :  { %1623 = vmatprep.subr.bf16.mxu0 %v2200_v38  ;;  %1643 = vmatprep.subr.bf16.mxu1 %v2200_v38 }
 0x133   :  { %1624 = vmatpush3.bf16.msra.mxu0 %v1847_v48  ;;  %1644 = vmatpush3.bf16.msra.mxu1 %v1848_v49 }
 0x134   :  { %1625 = vmatprep.subr.bf16.mxu0 %v2200_v38  ;;  %1645 = vmatprep.subr.bf16.mxu1 %v2200_v38 }
 0x137   :  { %1626 = vmatpush3.bf16.msra.mxu0 %v1849_v50  ;;  %1646 = vmatpush3.bf16.msra.mxu1 %v1850_v51 }
 0x138   :  { %1627 = vmatprep.subr.bf16.mxu0 %v2200_v38  ;;  %1647 = vmatprep.subr.bf16.mxu1 %v2200_v38 }
 0x13b   :  { %1628 = vmatpush3.bf16.msra.mxu0 %v1851_v52  ;;  %1648 = vmatpush3.bf16.msra.mxu1 %v1852_v53  ;;  %v187_v52 = vld [vmem:[#allocation8] sm:$0xff] }
 0x13c   :  { %1653 = vmatprep.subr.bf16.mxu0 %v2200_v38 }
 0x13e   :  { %1630 = vmatmul.mubr.bf16.vlgmr.msra.gmra.mrb[12].mxu0 %v193_v54 }
 0x13f   :  { %1669 = vmatprep.mubr.msk.bf16.mxu0 %vm2201_vm0, %v2200_v38  ;;  %1654 = vmatpush3.bf16.msra.mxu0 %v1853_v55 }
 0x140   :  { %1655 = vmatprep.subr.bf16.mxu0 %v2200_v38 }
 0x143   :  { %1656 = vmatpush3.bf16.msra.mxu0 %v1854_v56 }
 0x144   :  { %1657 = vmatprep.subr.bf16.mxu0 %v2200_v38 }
 0x147   :  { %1658 = vmatpush3.bf16.msra.mxu0 %v1855_v57 }
 0x148   :  { %1659 = vmatprep.subr.bf16.mxu0 %v2200_v38 }
 0x14b   :  { %1660 = vmatpush3.bf16.msra.mxu0 %v1856_v40 }
 0x14c   :  { %1661 = vmatprep.subr.bf16.mxu0 %v2200_v38 }
 0x1b1   :  { %v452_v58 = vpop.f32.mrb[0].mxu0  ;;  %v493_v59 = vpop.f32.mrb[0].mxu1 }
 0x1b2   :  { %v454_v60 = vpop.f32.mrb[1].mxu0  ;;  %v495_v61 = vpop.f32.mrb[1].mxu1 }
 0x1b3   :  { %v456_v62 = vpop.f32.mrb[2].mxu0  ;;  %v497_v63 = vpop.f32.mrb[2].mxu1 }
 0x1b4   :  { %v457_v1 = vpop.f32.mrb[3].mxu0  ;;  %v498_v2 = vpop.f32.mrb[3].mxu1 }
 0x1d1   :  { %v694_v3 = vpop.f32.mrb[4].mxu0  ;;  %v735_v4 = vpop.f32.mrb[4].mxu1 }
 0x1d2   :  { %v695_v5 = vadd.f32 %v694_v3, %v452_v58  ;;  %v736_v6 = vadd.f32 %v735_v4, %v493_v59  ;;  %v696_v7 = vpop.f32.mrb[5].mxu0  ;;  %v737_v8 = vpop.f32.mrb[5].mxu1  ;;  %v1857_v4 = vld [vmem:[#allocation17 + $0x20] sm:$0xff]  }
 0x1d3   :  { %v697_v9 = vadd.f32 %v696_v7, %v454_v60  ;;  %v738_v10 = vadd.f32 %v737_v8, %v495_v61  ;;  %v698_v11 = vpop.f32.mrb[6].mxu0  ;;  %v739_v12 = vpop.f32.mrb[6].mxu1  ;;  %1662 = vmatpush3.bf16.msra.mxu0 %v1857_v4  ;;  %v1860_v7 = vld [vmem:[#allocation17 + $0x38] sm:$0xff]  }
 0x1d4   :  { %v699_v13 = vpop.f32.mrb[7].mxu0  ;;  %v740_v14 = vpop.f32.mrb[7].mxu1  ;;  %1663 = vmatprep.subr.bf16.mxu0 %v2200_v38 }
 0x1f1   :  { %v969_v21 = vpop.f32.mrb[8].mxu0  ;;  %v1010_v22 = vpop.f32.mrb[8].mxu1 }
 0x1f2   :  { %v1017_v0 = vadd.f32 %v969_v21, %v695_v5  ;;  %v1019_v24 = vadd.f32 %v1010_v22, %v736_v6  ;;  %v971_v25 = vpop.f32.mrb[9].mxu0  ;;  %v1012_v26 = vpop.f32.mrb[9].mxu1  ;;  %v1858_v5 = vld [vmem:[#allocation17 + $0x28] sm:$0xff]   ;;  %v1859_v6 = vld [vmem:[#allocation17 + $0x30] sm:$0xff]  }
 0x1f3   :  { %v1018_v27 = vadd.f32 %v971_v25, %v697_v9  ;;  %v1020_v28 = vadd.f32 %v1012_v26, %v738_v10  ;;  %v973_v30 = vpop.f32.mrb[10].mxu0  ;;  %v1014_v31 = vpop.f32.mrb[10].mxu1  ;;  %1664 = vmatpush3.bf16.msra.mxu0 %v1858_v5  ;;  %v1576_v9 = vld [vmem:[%s2544_s11] ss:$0 sm:$0xff]  ;;  %s2202_s11 = smov [#allocation20]  }
 0x1f4   :  { %v1043_v32 = vadd.f32 %v1026_v20, %v1017_v0  ;;  %v974_v33 = vpop.f32.mrb[11].mxu0  ;;  %v1015_v34 = vpop.f32.mrb[11].mxu1  ;;  %v1045_v45 = vadd.f32 %v1034_v43, %v1019_v24  ;;  %1665 = vmatprep.subr.bf16.mxu0 %v2200_v38  ;;  %s1430_s29 = sshll.u32 %s2202_s11, 4  ;;  %s1431_s29 = int_to_ptr.vmem [resolvable:$true] %s1430_s29 }
 0x1f5   :  { %v1044_v35 = vadd.f32 %v1030_v23, %v1018_v27  ;;  %v1046_v42 = vadd.f32 %v1038_v39, %v1020_v28  ;;  %s2103_s19 = scalar_lea.vmem %s1431_s29, 128  ;;  %p2108_p11 = scmp.lt.s32.totalorder %s1431_s29, %s1431_s29 }
 0x1f6   :  { %v1557_v36 = vmul.f32 -1.442695, %v1043_v32  ;;  %p2104_p10 = scmp.ne.s32.totalorder %s1431_s29, %s2103_s19  ;;  %p2109_p12 = scmp.lt.s32.totalorder %s2103_s19, %s2103_s19 }
 0x1f7   :  { %v1558_v37 = vmul.f32 -1.442695, %v1044_v35  ;;  %v1559_v44 = vmul.f32 -1.442695, %v1046_v42  ;;  %1666 = vmatpush3.bf16.msra.mxu0 %v1859_v6 }
 0x1f8   :  { %1861 = vpow2.f32 %v1557_v36  ;;  %1667 = vmatprep.subr.bf16.mxu0 %v2200_v38  ;;  %v1577_v38 = vld [vmem:[%s2546_s13] ss:$0 sm:$0xff]  ;;  %p2110_p13 = por %p2109_p12, %p2108_p11 }
 0x1f9   :  { %1863 = vpow2.f32 %v1558_v37 }
 0x1fa   :  { %1865 = vpow2.f32 %v1559_v44  ;;  %p2111_p0 = pnand %p2110_p13, %p2104_p10 }
 0x1fb   :  { %1867 = vtanh.f32 %v1045_v45  ;;  %1668 = vmatpush3.bf16.msra.mxu0 %v1860_v7 }
 0x202   :  { %v1862_v46 = vpop.eup %1861 }
 0x203   :  { %v1864_v47 = vpop.eup %1863  ;;  %v1050_v48 = vadd.f32 1.0, %v1862_v46 }
 0x204   :  { %v1056_v49 = vadd.f32 1.0, %v1864_v47  ;;  %v1866_v50 = vpop.eup %1865 }
 0x205   :  { %1869 = vrcp.f32 %v1050_v48  ;;  %v1868_v51 = vpop.eup %1867  ;;  %v1063_v56 = vadd.f32 1.0, %v1866_v50 }
 0x206   :  { %1871 = vrcp.f32 %v1056_v49 }
 0x207   :  { %1873 = vrcp.f32 %v1063_v56 }
 0x20f   :  { %v1870_v53 = vpop.eup %1869 }
 0x210   :  { %v1872_v54 = vpop.eup %1871  ;;  %v1067_v55 = vmul.f32 %v1870_v53, %v1868_v51 }
 0x211   :  { %v1066_v57 = vmul.f32 %v1872_v54, %v187_v52  ;;  %v1874_v59 = vpop.eup %1873  ;;  %v1188_v63 = vpop.f32.mrb[12].mxu0 }
 0x212   :  { %v1631_v1 = vpop.f32.mrb[13].mxu0 }
 0x213   :  { %v1068_v58 = vadd.f32 %v1067_v55, %v1066_v57  ;;  %v1191_v2 = vpop.f32.mrb[14].mxu0 }
 0x214   :  { %v1632_v3 = vpop.f32.mrb[15].mxu0 }
 0x215   :  { %1072 = vst [vmem:[#allocation22] sm:$0xff] %v1068_v58  ;;  %1875 = vtanh.f32 %v1068_v58 }
 0x21f   :  { %v1876_v60 = vpop.eup %1875 }
 0x220   :  { %v1070_v61 = vmul.f32 %v1876_v60, %v1874_v59 }
 0x222   :  { %v1073_v62 = vpack.c.bf16 %v1070_v61, %v1070_v61  ;;  %1071 = vst [vmem:[#allocation20] sm:$0xff] %v1070_v61 }
 0x224   :  { %1650 = vmatmul.mubr.bf16.vlgmr.msra.gmra.mrb[12].mxu1 %v1073_v62 }
 0x2f7   :  { %v1276_v8 = vpop.f32.mrb[12].mxu1 }
 0x2f8   :  { %v1277_v10 = vadd.f32 %v1276_v8, %v1188_v63  ;;  %v1651_v11 = vpop.f32.mrb[13].mxu1 }
 0x2f9   :  { %v1279_v12 = vpop.f32.mrb[14].mxu1 }
 0x2fa   :  { %v1289_v13 = vadd.f32 %v1576_v9, %v1277_v10  ;;  %v1652_v14 = vpop.f32.mrb[15].mxu1 }
 0x2fc   :  { %1877 = vtanh.f32 %v1289_v13 }
 0x306   :  { %v1878_v15 = vpop.eup %1877 }
 0x307   :  { %v1291_v16 = vpack.c.bf16 %v1878_v15, %v1878_v15 }
 0x309   :  { %1670 = vmatmul.mubr.bf16.vlgmr.msra.gmra.mrb[16].mxu0 %v1291_v16 }
 0x3dc   :  { %v1397_v17 = vpop.f32.mrb[16].mxu0 }
 0x3dd   :  { %v1398_v18 = vadd.f32 %v1577_v38, %v1397_v17  ;;  %v1671_v19 = vpop.f32.mrb[17].mxu0 }
 0x3de   :  { %v1400_v20 = vpop.f32.mrb[18].mxu0 }
 0x3df   :  { %1403 = vmax.xlane.f32.xlu0 %v1398_v18  ;;  %v1672_v21 = vpop.f32.mrb[19].mxu0 }
 0x46c   :  { %v1404_v22 = vpop.xlane.xlu0 %1403 }
 0x46d   :  { %v1405_v23 = vsub.f32 %v1398_v18, %v1404_v22 }
 0x46f   :  { %v1406_v0 = vmul.f32 1.442695, %v1405_v23 }
 0x471   :  { %1879 = vpow2.f32 %v1406_v0 }
 0x47b   :  { %v1880_v24 = vpop.eup %1879 }
 0x47c   :  { %1408 = vadd.xlane.f32.xlu0 %v1880_v24 }
 0x47d   :  { %2114 = shalt.err (!%p2111_p0)
}
 0x47e   :  { %s2115_s9 = scalar_lea.hbm %s2548_s15, 128 }
 0x47f   :  { %p2116_p1 = scmp.ne.s32.totalorder %s2548_s15, %s2115_s9  ;;  %p2119_p2 = scmp.lt.u32.totalorder %s2115_s9, %s2548_s15 }
 0x481   :  { %p2121_p3 = pnand %p2119_p2, %p2116_p1 }
 0x483   :  { %2124 = shalt.err (!%p2121_p3)
}
 0x484   :  { %1433 = dma.vmem_to_hbm [thread:$0]  %s1431_s29, 128, %s2548_s15, [#allocation21]  }
 0x485   :  { %s2203_s4 = smov [#allocation22]  }
 0x486   :  { %s1440_s1 = sshll.u32 %s2203_s4, 4  ;;  %s1441_s1 = int_to_ptr.vmem [resolvable:$true] %s1440_s1 }
 0x487   :  { %s2125_s5 = scalar_lea.vmem %s1441_s1, 128  ;;  %p2130_p5 = scmp.lt.s32.totalorder %s1441_s1, %s1441_s1 }
 0x488   :  { %p2126_p4 = scmp.ne.s32.totalorder %s1441_s1, %s2125_s5  ;;  %p2131_p6 = scmp.lt.s32.totalorder %s2125_s5, %s2125_s5 }
 0x48a   :  { %p2132_p7 = por %p2131_p6, %p2130_p5 }
 0x48c   :  { %p2133_p8 = pnand %p2132_p7, %p2126_p4 }
 0x48e   :  { %2136 = shalt.err (!%p2133_p8)
}
 0x48f   :  { %s2137_s17 = scalar_lea.hbm %s2549_s16, 128 }
 0x490   :  { %p2138_p9 = scmp.ne.s32.totalorder %s2549_s16, %s2137_s17  ;;  %p2141_p10 = scmp.lt.u32.totalorder %s2137_s17, %s2549_s16 }
 0x492   :  { %p2143_p11 = pnand %p2141_p10, %p2138_p9 }
 0x494   :  { %2146 = shalt.err (!%p2143_p11)
}
 0x495   :  { %1443 = dma.vmem_to_hbm [thread:$0]  %s1441_s1, 128, %s2549_s16, [#allocation21]  }
 0x496   :  { %s2204_s0 = smov [#allocation19]  }
 0x497   :  { %s1420_s8 = sshll.u32 %s2204_s0, 4  ;;  %s1421_s8 = int_to_ptr.vmem [resolvable:$true] %s1420_s8 }
 0x498   :  { %s2147_s2 = scalar_lea.vmem %s1421_s8, 128  ;;  %p2152_p13 = scmp.lt.s32.totalorder %s1421_s8, %s1421_s8 }
 0x499   :  { %p2148_p12 = scmp.ne.s32.totalorder %s1421_s8, %s2147_s2  ;;  %p2153_p0 = scmp.lt.s32.totalorder %s2147_s2, %s2147_s2 }
 0x49b   :  { %p2154_p1 = por %p2153_p0, %p2152_p13 }
 0x49d   :  { %p2155_p2 = pnand %p2154_p1, %p2148_p12 }
 0x509   :  { %v1409_v25 = vpop.xlane.xlu0 %1408 }
 0x50a   :  { %1881 = vlog2.f32 %v1409_v25 }
 0x514   :  { %v1882_v26 = vpop.eup %1881 }
 0x515   :  { %v1411_v27 = vmul.f32 0.6931472, %v1882_v26 }
 0x517   :  { %v1412_v28 = vsub.f32 %v1405_v23, %v1411_v27 }
 0x519   :  { %1413 = vst [vmem:[#allocation19] sm:$0xff] %v1412_v28 }
 0x51a   :  { %2158 = shalt.err (!%p2155_p2)
}
 0x51b   :  { %s2159_s16 = scalar_lea.hbm %s2547_s14, 128 }
 0x51c   :  { %p2160_p3 = scmp.ne.s32.totalorder %s2547_s14, %s2159_s16  ;;  %p2163_p4 = scmp.lt.u32.totalorder %s2159_s16, %s2547_s14 }
 0x51e   :  { %p2165_p5 = pnand %p2163_p4, %p2160_p3 }
 0x520   :  { %2168 = shalt.err (!%p2165_p5)
}
 0x521   :  { %1423 = dma.vmem_to_hbm [thread:$0]  %s1421_s8, 128, %s2547_s14, [#allocation4]  }
 0x522   :  { %2181 = dma.done.wait [#allocation4], 128  }
 0x523   :  { %2182 = vsyncadd [#allocation4], 4294967168 }
 0x524   :  { %2183 = dma.done.wait [#allocation21], 256  }
 0x525   :  { %2184 = vsyncadd [#allocation21], 4294967040 }
 0x526   :  { %1453 = vsyncpa [#allocation3], 1 }
 0x527   :  { %1454 = vsyncpa [#allocation6], 1 }
 0x528   :  { %1455 = vsyncpa [#allocation9], 1 }
 0x529   :  { %1456 = vsyncpa [#allocation12], 1 }
 0x52a   :  { %1457 = vsyncpa [#allocation15], 1 }
 0x52b   :  { %1458 = vsyncpa [#allocation18], 1 }
 0x52c   :  { %1459 = vsyncpa [#allocation4], 1 }
 0x52d   :  { %1460 = vsyncpa [#allocation21], 1 }

</bundles_post_ra>
